<compile_context>
chip_gen: v6e
topology: v6e:2x2x1
jax: 0.10.0
libtpu: 0.0.40
codegen_flags: <defaults>
</compile_context>

<pallas_src>
import functools

import jax
import jax.numpy as jnp
from jax import lax
from jax.experimental import pallas as pl
from jax.experimental.pallas import tpu as pltpu

F32 = jnp.float32
BF16 = jnp.bfloat16


# ============================================================================
# Kernel 1: full-sequence LSTM (encoder and decoder recurrence).
# ============================================================================
def _lstm_seq_kernel(*refs, apply_mask, batch, unroll):
    if apply_mask:
        (emb_ref, msk_ref, h0_ref, c0_ref,
         w_ih_ref, w_hh_ref, b_ref,
         ctx_ref, h_out_ref, c_out_ref, gates_scr) = refs
    else:
        (emb_ref, h0_ref, c0_ref,
         w_ih_ref, w_hh_ref, b_ref,
         ctx_ref, h_out_ref, c_out_ref, gates_scr) = refs
        msk_ref = None

    B = batch
    SB = emb_ref.shape[0]
    S = SB // B
    H = h0_ref.shape[-1]

    # Hoisted input projection: one (S*B, I) @ (I, 4H) bf16 MXU matmul with
    # f32 accumulation; combined bias (b_ih + b_hh) folded in once.
    gates_scr[...] = (
        jnp.dot(emb_ref[...], w_ih_ref[...], preferred_element_type=F32)
        + b_ref[...])

    w_hh = w_hh_ref[...]          # bf16, loaded once, hoisted out of the loop
    # TODO(synk): keep W_hh resident in the MXU via pltpu.matmul_push_rhs.

    def step(t, carry):
        h, c = carry                                  # f32, vreg-resident
        r0 = pl.multiple_of(t * B, B)
        g = gates_scr[pl.ds(r0, B), :] + jnp.dot(
            h.astype(BF16), w_hh, preferred_element_type=F32)
        # Full-vreg nonlinearities, then slice the PyTorch-ordered gates.
        sg = jax.nn.sigmoid(g)
        th = jnp.tanh(g)
        i_g = sg[:, 0 * H:1 * H]
        f_g = sg[:, 1 * H:2 * H]
        g_g = th[:, 2 * H:3 * H]
        o_g = sg[:, 3 * H:4 * H]
        c_new = f_g * c + i_g * g_g
        h_new = o_g * jnp.tanh(c_new)
        if apply_mask:
            m = msk_ref[pl.ds(r0, B), :]              # (B, 1): pads keep state
            h_new = m * h_new + (1.0 - m) * h
            c_new = m * c_new + (1.0 - m) * c
        ctx_ref[pl.ds(r0, B), :] = h_new
        return (h_new, c_new)

    h_f, c_f = lax.fori_loop(0, S, step, (h0_ref[...], c0_ref[...]),
                             unroll=unroll)
    h_out_ref[...] = h_f
    c_out_ref[...] = c_f


def lstm_seq(emb2d, msk2d, h0, c0, w_ih_bf16, w_hh_bf16, b, *, batch):
    """emb2d: (S*B, I) bf16 time-major-flat; msk2d: (S*B, 1) f32 or None."""
    SB = emb2d.shape[0]
    S = SB // batch
    H = w_hh_bf16.shape[0]
    apply_mask = msk2d is not None
    inputs = (emb2d,) + ((msk2d,) if apply_mask else ()) + (
        h0, c0, w_ih_bf16, w_hh_bf16, b)
    kernel = functools.partial(_lstm_seq_kernel, apply_mask=apply_mask,
                               batch=batch, unroll=min(8, S))
    return pl.pallas_call(
        kernel,
        out_shape=(
            jax.ShapeDtypeStruct((SB, H), F32),       # all hidden states
            jax.ShapeDtypeStruct((batch, H), F32),    # h_T
            jax.ShapeDtypeStruct((batch, H), F32),    # c_T
        ),
        scratch_shapes=[pltpu.VMEM((SB, 4 * H), F32)],  # hoisted gate inputs
        # TODO(synk): chunk over S (grid axis 'arbitrary') + vmem_limit_bytes
        # once S*B grows beyond VMEM (v7x: 64 MiB physical).
    )(*inputs)


# ============================================================================
# Kernel 2: batched decoder post-processing, gridded over T blocks (parallel).
# ============================================================================
def _dec_post_kernel(h_ref, ctx_ref, ctx_t_ref, msk_ref, sel_ref,
                     w_a_ref, w_cc_ref, w_ch_ref, w_out_ref, b_out_ref,
                     w_pcc_ref, w_pch_ref, b_pc_ref,
                     prob_ref, attn_ref, pcopy_ref):
    Tb, B, H = h_ref.shape
    S = sel_ref.shape[1]
    V = w_out_ref.shape[1]

    h2 = h_ref[...].reshape(Tb * B, H)                # rows in (t, b) order
    h2b = h2.astype(BF16)

    # --- Luong 'general' attention over the (S*B)-wide context; cross-batch
    #     and padded columns masked, so softmax weights there are exactly 0 ---
    hw = jnp.dot(h2b, w_a_ref[...], preferred_element_type=F32)
    scores = jnp.dot(hw.astype(BF16), ctx_t_ref[...],
                     preferred_element_type=F32)              # (Tb*B, S*B)
    msk = jnp.tile(msk_ref[...], (Tb, 1))                     # (Tb*B, S*B)
    scores = jnp.where(msk > 0.5, scores, -1e9)
    probs = jax.nn.softmax(scores, axis=-1)
    probs_b = probs.astype(BF16)
    ctx_vec = jnp.dot(probs_b, ctx_ref[...],
                      preferred_element_type=F32)             # (Tb*B, H)
    # compress the masked (S*B) score columns back to S per-batch columns
    attn_c = jnp.dot(probs, sel_ref[...], preferred_element_type=F32)
    attn_ref[...] = attn_c.reshape(Tb, B, S)

    # --- attentional hidden state: tanh(W_c [ctx_vec; h]) ---
    attn_h = jnp.tanh(
        jnp.dot(ctx_vec.astype(BF16), w_cc_ref[...], preferred_element_type=F32)
        + jnp.dot(h2b, w_ch_ref[...], preferred_element_type=F32))

    # --- vocab projection + log-softmax (lane-dense V) ---
    logits = jnp.dot(attn_h.astype(BF16), w_out_ref[...],
                     preferred_element_type=F32) + b_out_ref[...]
    prob_ref[...] = jax.nn.log_softmax(logits, axis=-1).reshape(Tb, B, V)

    # --- copy / generate gate: VPU multiply + lane reduction ---
    pc = (jnp.sum(ctx_vec * w_pcc_ref[...], axis=-1, keepdims=True)
          + jnp.sum(h2 * w_pch_ref[...], axis=-1, keepdims=True)
          + b_pc_ref[...])
    pcopy_ref[...] = jax.nn.sigmoid(pc).reshape(Tb, B, 1)


def dec_post(h_tbh, ctx2d_bf, ctx_t_bf, amsk_bc, sel, p):
    T, B, H = h_tbh.shape
    SB = ctx2d_bf.shape[0]
    S = sel.shape[1]
    V = p['w_out'].shape[1]
    t_blk = T // 2 if (T % 2 == 0 and T >= 2) else T
    grid = (T // t_blk,)

    w_a = p['w_a'].astype(BF16)
    w_cc = p['w_c_ctx'].astype(BF16)
    w_ch = p['w_c_h'].astype(BF16)
    w_out = p['w_out'].astype(BF16)
    w_pcc = p['w_pc_ctx'].reshape(1, H).astype(F32)
    w_pch = p['w_pc_h'].reshape(1, H).astype(F32)

    full2 = lambda i: (0, 0)
    return pl.pallas_call(
        _dec_post_kernel,
        grid=grid,
        in_specs=[
            pl.BlockSpec((t_blk, B, H), lambda i: (i, 0, 0)),   # h block over T
            pl.BlockSpec((SB, H), full2),                       # ctx (rows s*B+b)
            pl.BlockSpec((H, SB), full2),                       # ctx^T (precomputed)
            pl.BlockSpec((B, SB), full2),                       # same-batch+pad mask
            pl.BlockSpec((SB, S), full2),                       # column compressor
            pl.BlockSpec((H, H), full2),                        # w_a
            pl.BlockSpec((H, H), full2),                        # w_c_ctx
            pl.BlockSpec((H, H), full2),                        # w_c_h
            pl.BlockSpec((H, V), full2),                        # w_out
            pl.BlockSpec((1, V), full2),                        # b_out
            pl.BlockSpec((1, H), full2),                        # w_pc_ctx row
            pl.BlockSpec((1, H), full2),                        # w_pc_h row
            pl.BlockSpec((1, 1), full2),                        # b_pc
        ],
        out_specs=(
            pl.BlockSpec((t_blk, B, V), lambda i: (i, 0, 0)),
            pl.BlockSpec((t_blk, B, S), lambda i: (i, 0, 0)),
            pl.BlockSpec((t_blk, B, 1), lambda i: (i, 0, 0)),
        ),
        out_shape=(
            jax.ShapeDtypeStruct((T, B, V), F32),   # log-probs (time-major)
            jax.ShapeDtypeStruct((T, B, S), F32),   # attention weights
            jax.ShapeDtypeStruct((T, B, 1), F32),   # p_copy
        ),
        compiler_params=pltpu.CompilerParams(
            dimension_semantics=("parallel",)),     # v7x: shards T across TCs
        # TODO(synk): add a 'parallel' V grid axis + two-pass log-softmax at
        # production vocab sizes (w_out must not exceed VMEM).
    )(h_tbh, ctx2d_bf, ctx_t_bf, amsk_bc, sel,
      w_a, w_cc, w_ch, w_out, p['b_out'], w_pcc, w_pch, p['b_pc'])


# ----------------------------------------------------------------------------
# Parameters & top-level forward (glue in plain JAX)
# ----------------------------------------------------------------------------
class Opt:
    inp_dim = 32
    tag_dim = 8
    hid_dim = 32
    word_dict_size = 128
    full_dict_size = 160
    max_len_dec = 6
    enc = 'lstm'
    coverage = False
    copy = True
    dropout = 0.0


def init_params(key, opt, num_tags):
    ks = jax.random.split(key, 16)
    s = 0.1
    I = opt.inp_dim + 2 * opt.tag_dim
    H = opt.hid_dim
    V = opt.word_dict_size
    nrm = lambda k, shape: (jax.random.normal(k, shape, dtype=F32) * s)
    return {
        'word_emb': nrm(ks[0], (V, opt.inp_dim)),
        'tag_emb0': nrm(ks[1], (num_tags, opt.tag_dim)),
        'tag_emb1': nrm(ks[2], (num_tags, opt.tag_dim)),
        'enc_w_ih': nrm(ks[3], (I, 4 * H)),
        'enc_w_hh': nrm(ks[4], (H, 4 * H)),
        'enc_b':    jnp.zeros((1, 4 * H), F32),   # = b_ih + b_hh combined
        'dec_w_ih': nrm(ks[5], (opt.inp_dim, 4 * H)),
        'dec_w_hh': nrm(ks[6], (H, 4 * H)),
        'dec_b':    jnp.zeros((1, 4 * H), F32),   # = b_ih + b_hh combined
        'w_a':      nrm(ks[7], (H, H)),
        'w_c_ctx':  nrm(ks[8], (H, H)),
        'w_c_h':    nrm(ks[9], (H, H)),
        'w_out':    nrm(ks[10], (H, V)),
        'b_out':    jnp.zeros((1, V), F32),
        'w_pc_ctx': nrm(ks[11], (H, 1)),
        'w_pc_h':   nrm(ks[12], (H, 1)),
        'b_pc':     jnp.zeros((1, 1), F32),
    }


def seq2seq_forward_train(params, inp_var, inp_msk, tgt_var, tgt_msk):
    """inp_var = (word_ids, tag0_ids, tag1_ids), each (S, B); tgt_var (T, B)."""
    inp_word, inp_tag0, inp_tag1 = inp_var
    S, B = inp_word.shape
    T = tgt_var.shape[0]
    H = params['w_a'].shape[0]

    # SingleEmbeddings: word emb ++ two tag embs, flattened (S*B, I) (free).
    emb = jnp.concatenate([
        jnp.take(params['word_emb'], inp_word, axis=0),
        jnp.take(params['tag_emb0'], inp_tag0, axis=0),
        jnp.take(params['tag_emb1'], inp_tag1, axis=0),
    ], axis=-1)
    emb2d = emb.reshape(S * B, -1).astype(BF16)
    enc_msk = inp_msk.astype(F32).reshape(S * B, 1)

    # ---- encoder: masked LSTM over S ----
    zeros_bh = jnp.zeros((B, H), F32)
    context2d, h_t, c_t = lstm_seq(
        emb2d, enc_msk, zeros_bh, zeros_bh,
        params['enc_w_ih'].astype(BF16), params['enc_w_hh'].astype(BF16),
        params['enc_b'], batch=B)

    # ---- decoder recurrence: teacher-forced LSTM over T (no mask input) ----
    tgt_emb2d = jnp.take(params['word_emb'], tgt_var, axis=0
                         ).reshape(T * B, -1).astype(BF16)
    h_all2d, _, _ = lstm_seq(
        tgt_emb2d, None, h_t, c_t,
        params['dec_w_ih'].astype(BF16), params['dec_w_hh'].astype(BF16),
        params['dec_b'], batch=B)

    # ---- batched attention / vocab projection / copy gate for all T ----
    h_tbh = h_all2d.reshape(T, B, H)                  # free HBM reshape
    ctx_bf = context2d.astype(BF16)                   # (S*B, H)
    ctx_t = ctx_bf.T                                  # (H, S*B), computed once
    # column mask combining same-batch selection with the source padding mask
    col_bid = jnp.tile(jnp.arange(B, dtype=jnp.int32), S)          # (S*B,)
    amsk_flat = inp_msk.astype(F32).reshape(S * B)
    amsk_bc = ((col_bid[None, :] == jnp.arange(B, dtype=jnp.int32)[:, None])
               .astype(F32) * amsk_flat[None, :])                  # (B, S*B)
    # compressor: sums the (masked-to-zero) S*B attention columns back to S
    sel = ((jnp.arange(S * B, dtype=jnp.int32)[:, None] // B)
           == jnp.arange(S, dtype=jnp.int32)[None, :]).astype(F32)  # (S*B, S)

    probs, attns, p_copys = dec_post(h_tbh, ctx_bf, ctx_t, amsk_bc, sel, params)

    decoder_outputs = jnp.argmax(probs, axis=-1)      # (T, B) greedy ids
    discount = jnp.zeros((), F32)   # TODO(synk): length/repetition discount
    loss_cov = jnp.zeros((), F32)   # TODO(synk): coverage loss (opt.coverage)
    return probs, decoder_outputs, attns, discount, loss_cov, p_copys


# ----------------------------------------------------------------------------
if __name__ == "__main__":
    opt = Opt()
    num_tags = 16
    S, B, T = 8, 2, 6

    key = jax.random.PRNGKey(0)
    k_p, k_w, k_t0, k_t1, k_tgt = jax.random.split(key, 5)

    params = init_params(k_p, opt, num_tags)

    inp_word = jax.random.randint(k_w, (S, B), 0, opt.word_dict_size, jnp.int32)
    inp_tag0 = jax.random.randint(k_t0, (S, B), 0, num_tags, jnp.int32)
    inp_tag1 = jax.random.randint(k_t1, (S, B), 0, num_tags, jnp.int32)
    tgt_var = jax.random.randint(k_tgt, (T, B), 0, opt.word_dict_size, jnp.int32)

    # second batch element is 2 tokens shorter (padded tail)
    inp_msk = jnp.ones((S, B), jnp.float32).at[S - 2:, 1].set(0.0)
    tgt_msk = jnp.ones((T, B), jnp.float32)

    outs = seq2seq_forward_train(params,
                                 (inp_word, inp_tag0, inp_tag1),
                                 inp_msk, tgt_var, tgt_msk)
    outs = jax.block_until_ready(outs)

    probs, dec_out, attns, discount, loss_cov, p_copys = outs
    assert probs.shape == (T, B, opt.word_dict_size)
    assert dec_out.shape == (T, B)
    assert attns.shape == (T, B, S)
    assert p_copys.shape == (T, B, 1)
    assert bool(jnp.all(jnp.isfinite(probs)))
    assert bool(jnp.all(jnp.isfinite(attns)))
    assert bool(jnp.all(jnp.isfinite(p_copys)))
    print("KERNEL_OK")
</pallas_src>

<mosaic_0001>
module attributes {stable_mosaic.version = 11 : i64} {
  func.func @_lstm_seq_kernel(%arg0: memref<16x48xbf16, #tpu.memory_space<vmem>>, %arg1: memref<16x1xf32, #tpu.memory_space<vmem>>, %arg2: memref<2x32xf32, #tpu.memory_space<vmem>>, %arg3: memref<2x32xf32, #tpu.memory_space<vmem>>, %arg4: memref<48x128xbf16, #tpu.memory_space<vmem>>, %arg5: memref<32x128xbf16, #tpu.memory_space<vmem>>, %arg6: memref<1x128xf32, #tpu.memory_space<vmem>>, %arg7: memref<16x32xf32, #tpu.memory_space<vmem>>, %arg8: memref<2x32xf32, #tpu.memory_space<vmem>>, %arg9: memref<2x32xf32, #tpu.memory_space<vmem>>, %arg10: memref<16x128xf32, #tpu.memory_space<vmem>>) attributes {dimension_semantics = [], scalar_prefetch = 0 : i64, scratch_operands = 1 : i64, tpu.core_type = #tpu.core_type<tc>} {
    %c0 = arith.constant 0 : index
    %c0_0 = arith.constant 0 : index
    %0 = vector.load %arg0[%c0, %c0_0] : memref<16x48xbf16, #tpu.memory_space<vmem>>, vector<16x48xbf16>
    %c0_1 = arith.constant 0 : index
    %c0_2 = arith.constant 0 : index
    %1 = vector.load %arg4[%c0_1, %c0_2] : memref<48x128xbf16, #tpu.memory_space<vmem>>, vector<48x128xbf16>
    %cst = arith.constant dense<0.000000e+00> : vector<16x128xf32>
    %2 = tpu.matmul %0, %1, %cst {dimension_numbers = #tpu.dot_dimension_numbers<[1], [0], [0], [1], [0, 0, 1, 1], [], []>} : vector<16x48xbf16>, vector<48x128xbf16>, vector<16x128xf32> -> vector<16x128xf32>
    %c0_3 = arith.constant 0 : index
    %c0_4 = arith.constant 0 : index
    %3 = vector.load %arg6[%c0_3, %c0_4] : memref<1x128xf32, #tpu.memory_space<vmem>>, vector<1x128xf32>
    %4 = vector.broadcast %3 : vector<1x128xf32> to vector<16x128xf32>
    %5 = arith.addf %2, %4 : vector<16x128xf32>
    %c0_5 = arith.constant 0 : index
    %c0_6 = arith.constant 0 : index
    %6 = vector.load %arg10[%c0_5, %c0_6] : memref<16x128xf32, #tpu.memory_space<vmem>>, vector<16x128xf32>
    tpu.vector_store %arg10[%c0_5, %c0_6], %5 {strides = array<i32>} : memref<16x128xf32, #tpu.memory_space<vmem>>, vector<16x128xf32>,
    %c0_7 = arith.constant 0 : index
    %c0_8 = arith.constant 0 : index
    %7 = vector.load %arg5[%c0_7, %c0_8] : memref<32x128xbf16, #tpu.memory_space<vmem>>, vector<32x128xbf16>
    %c0_9 = arith.constant 0 : index
    %c0_10 = arith.constant 0 : index
    %8 = vector.load %arg2[%c0_9, %c0_10] : memref<2x32xf32, #tpu.memory_space<vmem>>, vector<2x32xf32>
    %c0_11 = arith.constant 0 : index
    %c0_12 = arith.constant 0 : index
    %9 = vector.load %arg3[%c0_11, %c0_12] : memref<2x32xf32, #tpu.memory_space<vmem>>, vector<2x32xf32>
    %c0_i32 = arith.constant 0 : i32
    %c2_i32 = arith.constant 2 : i32
    %10 = arith.muli %c0_i32, %c2_i32 : i32
    %11 = tpu.assume_multiple %10, 2 : i32
    %12 = arith.index_cast %11 : i32 to index
    %c0_13 = arith.constant 0 : index
    %13 = vector.load %arg10[%12, %c0_13] : memref<16x128xf32, #tpu.memory_space<vmem>>, vector<2x128xf32>
    %14 = arith.truncf %8 : vector<2x32xf32> to vector<2x32xbf16>
    %cst_14 = arith.constant dense<0.000000e+00> : vector<2x128xf32>
    %15 = tpu.matmul %14, %7, %cst_14 {dimension_numbers = #tpu.dot_dimension_numbers<[1], [0], [0], [1], [0, 0, 1, 1], [], []>} : vector<2x32xbf16>, vector<32x128xbf16>, vector<2x128xf32> -> vector<2x128xf32>
    %16 = arith.addf %13, %15 : vector<2x128xf32>
    %17 = arith.negf %16 : vector<2x128xf32>
    %18 = math.exp %17 : vector<2x128xf32>
    %cst_15 = arith.constant 1.000000e+00 : f32
    %19 = vector.broadcast %cst_15 : f32 to vector<2x128xf32>
    %20 = arith.addf %19, %18 : vector<2x128xf32>
    %21 = arith.divf %19, %20 : vector<2x128xf32>
    %22 = math.tanh %16 : vector<2x128xf32>
    %23 = vector.extract_strided_slice %21 {offsets = [0, 0], sizes = [2, 32], strides = [1, 1]} : vector<2x128xf32> to vector<2x32xf32>
    %24 = vector.extract_strided_slice %21 {offsets = [0, 32], sizes = [2, 32], strides = [1, 1]} : vector<2x128xf32> to vector<2x32xf32>
    %25 = vector.extract_strided_slice %22 {offsets = [0, 64], sizes = [2, 32], strides = [1, 1]} : vector<2x128xf32> to vector<2x32xf32>
    %26 = vector.extract_strided_slice %21 {offsets = [0, 96], sizes = [2, 32], strides = [1, 1]} : vector<2x128xf32> to vector<2x32xf32>
    %27 = arith.mulf %24, %9 : vector<2x32xf32>
    %28 = arith.mulf %23, %25 : vector<2x32xf32>
    %29 = arith.addf %27, %28 : vector<2x32xf32>
    %30 = math.tanh %29 : vector<2x32xf32>
    %31 = arith.mulf %26, %30 : vector<2x32xf32>
    %32 = arith.index_cast %11 : i32 to index
    %c0_16 = arith.constant 0 : index
    %33 = vector.load %arg1[%32, %c0_16] : memref<16x1xf32, #tpu.memory_space<vmem>>, vector<2x1xf32>
    %34 = vector.broadcast %33 : vector<2x1xf32> to vector<2x32xf32>
    %35 = arith.mulf %34, %31 : vector<2x32xf32>
    %cst_17 = arith.constant 1.000000e+00 : f32
    %36 = vector.broadcast %cst_17 : f32 to vector<2x1xf32>
    %37 = arith.subf %36, %33 : vector<2x1xf32>
    %38 = vector.broadcast %37 : vector<2x1xf32> to vector<2x32xf32>
    %39 = arith.mulf %38, %8 : vector<2x32xf32>
    %40 = arith.addf %35, %39 : vector<2x32xf32>
    %41 = vector.broadcast %33 : vector<2x1xf32> to vector<2x32xf32>
    %42 = arith.mulf %41, %29 : vector<2x32xf32>
    %cst_18 = arith.constant 1.000000e+00 : f32
    %43 = vector.broadcast %cst_18 : f32 to vector<2x1xf32>
    %44 = arith.subf %43, %33 : vector<2x1xf32>
    %45 = vector.broadcast %44 : vector<2x1xf32> to vector<2x32xf32>
    %46 = arith.mulf %45, %9 : vector<2x32xf32>
    %47 = arith.addf %42, %46 : vector<2x32xf32>
    %48 = arith.index_cast %11 : i32 to index
    %c0_19 = arith.constant 0 : index
    %49 = vector.load %arg7[%48, %c0_19] : memref<16x32xf32, #tpu.memory_space<vmem>>, vector<2x32xf32>
    tpu.vector_store %arg7[%48, %c0_19], %40 {strides = array<i32>} : memref<16x32xf32, #tpu.memory_space<vmem>>, vector<2x32xf32>,
    %c1_i32 = arith.constant 1 : i32
    %c2_i32_20 = arith.constant 2 : i32
    %50 = arith.muli %c1_i32, %c2_i32_20 : i32
    %51 = tpu.assume_multiple %50, 2 : i32
    %52 = arith.index_cast %51 : i32 to index
    %c0_21 = arith.constant 0 : index
    %53 = vector.load %arg10[%52, %c0_21] : memref<16x128xf32, #tpu.memory_space<vmem>>, vector<2x128xf32>
    %54 = arith.truncf %40 : vector<2x32xf32> to vector<2x32xbf16>
    %cst_22 = arith.constant dense<0.000000e+00> : vector<2x128xf32>
    %55 = tpu.matmul %54, %7, %cst_22 {dimension_numbers = #tpu.dot_dimension_numbers<[1], [0], [0], [1], [0, 0, 1, 1], [], []>} : vector<2x32xbf16>, vector<32x128xbf16>, vector<2x128xf32> -> vector<2x128xf32>
    %56 = arith.addf %53, %55 : vector<2x128xf32>
    %57 = arith.negf %56 : vector<2x128xf32>
    %58 = math.exp %57 : vector<2x128xf32>
    %cst_23 = arith.constant 1.000000e+00 : f32
    %59 = vector.broadcast %cst_23 : f32 to vector<2x128xf32>
    %60 = arith.addf %59, %58 : vector<2x128xf32>
    %61 = arith.divf %59, %60 : vector<2x128xf32>
    %62 = math.tanh %56 : vector<2x128xf32>
    %63 = vector.extract_strided_slice %61 {offsets = [0, 0], sizes = [2, 32], strides = [1, 1]} : vector<2x128xf32> to vector<2x32xf32>
    %64 = vector.extract_strided_slice %61 {offsets = [0, 32], sizes = [2, 32], strides = [1, 1]} : vector<2x128xf32> to vector<2x32xf32>
    %65 = vector.extract_strided_slice %62 {offsets = [0, 64], sizes = [2, 32], strides = [1, 1]} : vector<2x128xf32> to vector<2x32xf32>
    %66 = vector.extract_strided_slice %61 {offsets = [0, 96], sizes = [2, 32], strides = [1, 1]} : vector<2x128xf32> to vector<2x32xf32>
    %67 = arith.mulf %64, %47 : vector<2x32xf32>
    %68 = arith.mulf %63, %65 : vector<2x32xf32>
    %69 = arith.addf %67, %68 : vector<2x32xf32>
    %70 = math.tanh %69 : vector<2x32xf32>
    %71 = arith.mulf %66, %70 : vector<2x32xf32>
    %72 = arith.index_cast %51 : i32 to index
    %c0_24 = arith.constant 0 : index
    %73 = vector.load %arg1[%72, %c0_24] : memref<16x1xf32, #tpu.memory_space<vmem>>, vector<2x1xf32>
    %74 = vector.broadcast %73 : vector<2x1xf32> to vector<2x32xf32>
    %75 = arith.mulf %74, %71 : vector<2x32xf32>
    %cst_25 = arith.constant 1.000000e+00 : f32
    %76 = vector.broadcast %cst_25 : f32 to vector<2x1xf32>
    %77 = arith.subf %76, %73 : vector<2x1xf32>
    %78 = vector.broadcast %77 : vector<2x1xf32> to vector<2x32xf32>
    %79 = arith.mulf %78, %40 : vector<2x32xf32>
    %80 = arith.addf %75, %79 : vector<2x32xf32>
    %81 = vector.broadcast %73 : vector<2x1xf32> to vector<2x32xf32>
    %82 = arith.mulf %81, %69 : vector<2x32xf32>
    %cst_26 = arith.constant 1.000000e+00 : f32
    %83 = vector.broadcast %cst_26 : f32 to vector<2x1xf32>
    %84 = arith.subf %83, %73 : vector<2x1xf32>
    %85 = vector.broadcast %84 : vector<2x1xf32> to vector<2x32xf32>
    %86 = arith.mulf %85, %47 : vector<2x32xf32>
    %87 = arith.addf %82, %86 : vector<2x32xf32>
    %88 = arith.index_cast %51 : i32 to index
    %c0_27 = arith.constant 0 : index
    %89 = vector.load %arg7[%88, %c0_27] : memref<16x32xf32, #tpu.memory_space<vmem>>, vector<2x32xf32>
    tpu.vector_store %arg7[%88, %c0_27], %80 {strides = array<i32>} : memref<16x32xf32, #tpu.memory_space<vmem>>, vector<2x32xf32>,
    %c2_i32_28 = arith.constant 2 : i32
    %c2_i32_29 = arith.constant 2 : i32
    %90 = arith.muli %c2_i32_28, %c2_i32_29 : i32
    %91 = tpu.assume_multiple %90, 2 : i32
    %92 = arith.index_cast %91 : i32 to index
    %c0_30 = arith.constant 0 : index
    %93 = vector.load %arg10[%92, %c0_30] : memref<16x128xf32, #tpu.memory_space<vmem>>, vector<2x128xf32>
    %94 = arith.truncf %80 : vector<2x32xf32> to vector<2x32xbf16>
    %cst_31 = arith.constant dense<0.000000e+00> : vector<2x128xf32>
    %95 = tpu.matmul %94, %7, %cst_31 {dimension_numbers = #tpu.dot_dimension_numbers<[1], [0], [0], [1], [0, 0, 1, 1], [], []>} : vector<2x32xbf16>, vector<32x128xbf16>, vector<2x128xf32> -> vector<2x128xf32>
    %96 = arith.addf %93, %95 : vector<2x128xf32>
    %97 = arith.negf %96 : vector<2x128xf32>
    %98 = math.exp %97 : vector<2x128xf32>
    %cst_32 = arith.constant 1.000000e+00 : f32
    %99 = vector.broadcast %cst_32 : f32 to vector<2x128xf32>
    %100 = arith.addf %99, %98 : vector<2x128xf32>
    %101 = arith.divf %99, %100 : vector<2x128xf32>
    %102 = math.tanh %96 : vector<2x128xf32>
    %103 = vector.extract_strided_slice %101 {offsets = [0, 0], sizes = [2, 32], strides = [1, 1]} : vector<2x128xf32> to vector<2x32xf32>
    %104 = vector.extract_strided_slice %101 {offsets = [0, 32], sizes = [2, 32], strides = [1, 1]} : vector<2x128xf32> to vector<2x32xf32>
    %105 = vector.extract_strided_slice %102 {offsets = [0, 64], sizes = [2, 32], strides = [1, 1]} : vector<2x128xf32> to vector<2x32xf32>
    %106 = vector.extract_strided_slice %101 {offsets = [0, 96], sizes = [2, 32], strides = [1, 1]} : vector<2x128xf32> to vector<2x32xf32>
    %107 = arith.mulf %104, %87 : vector<2x32xf32>
    %108 = arith.mulf %103, %105 : vector<2x32xf32>
    %109 = arith.addf %107, %108 : vector<2x32xf32>
    %110 = math.tanh %109 : vector<2x32xf32>
    %111 = arith.mulf %106, %110 : vector<2x32xf32>
    %112 = arith.index_cast %91 : i32 to index
    %c0_33 = arith.constant 0 : index
    %113 = vector.load %arg1[%112, %c0_33] : memref<16x1xf32, #tpu.memory_space<vmem>>, vector<2x1xf32>
    %114 = vector.broadcast %113 : vector<2x1xf32> to vector<2x32xf32>
    %115 = arith.mulf %114, %111 : vector<2x32xf32>
    %cst_34 = arith.constant 1.000000e+00 : f32
    %116 = vector.broadcast %cst_34 : f32 to vector<2x1xf32>
    %117 = arith.subf %116, %113 : vector<2x1xf32>
    %118 = vector.broadcast %117 : vector<2x1xf32> to vector<2x32xf32>
    %119 = arith.mulf %118, %80 : vector<2x32xf32>
    %120 = arith.addf %115, %119 : vector<2x32xf32>
    %121 = vector.broadcast %113 : vector<2x1xf32> to vector<2x32xf32>
    %122 = arith.mulf %121, %109 : vector<2x32xf32>
    %cst_35 = arith.constant 1.000000e+00 : f32
    %123 = vector.broadcast %cst_35 : f32 to vector<2x1xf32>
    %124 = arith.subf %123, %113 : vector<2x1xf32>
    %125 = vector.broadcast %124 : vector<2x1xf32> to vector<2x32xf32>
    %126 = arith.mulf %125, %87 : vector<2x32xf32>
    %127 = arith.addf %122, %126 : vector<2x32xf32>
    %128 = arith.index_cast %91 : i32 to index
    %c0_36 = arith.constant 0 : index
    %129 = vector.load %arg7[%128, %c0_36] : memref<16x32xf32, #tpu.memory_space<vmem>>, vector<2x32xf32>
    tpu.vector_store %arg7[%128, %c0_36], %120 {strides = array<i32>} : memref<16x32xf32, #tpu.memory_space<vmem>>, vector<2x32xf32>,
    %c3_i32 = arith.constant 3 : i32
    %c2_i32_37 = arith.constant 2 : i32
    %130 = arith.muli %c3_i32, %c2_i32_37 : i32
    %131 = tpu.assume_multiple %130, 2 : i32
    %132 = arith.index_cast %131 : i32 to index
    %c0_38 = arith.constant 0 : index
    %133 = vector.load %arg10[%132, %c0_38] : memref<16x128xf32, #tpu.memory_space<vmem>>, vector<2x128xf32>
    %134 = arith.truncf %120 : vector<2x32xf32> to vector<2x32xbf16>
    %cst_39 = arith.constant dense<0.000000e+00> : vector<2x128xf32>
    %135 = tpu.matmul %134, %7, %cst_39 {dimension_numbers = #tpu.dot_dimension_numbers<[1], [0], [0], [1], [0, 0, 1, 1], [], []>} : vector<2x32xbf16>, vector<32x128xbf16>, vector<2x128xf32> -> vector<2x128xf32>
    %136 = arith.addf %133, %135 : vector<2x128xf32>
    %137 = arith.negf %136 : vector<2x128xf32>
    %138 = math.exp %137 : vector<2x128xf32>
    %cst_40 = arith.constant 1.000000e+00 : f32
    %139 = vector.broadcast %cst_40 : f32 to vector<2x128xf32>
    %140 = arith.addf %139, %138 : vector<2x128xf32>
    %141 = arith.divf %139, %140 : vector<2x128xf32>
    %142 = math.tanh %136 : vector<2x128xf32>
    %143 = vector.extract_strided_slice %141 {offsets = [0, 0], sizes = [2, 32], strides = [1, 1]} : vector<2x128xf32> to vector<2x32xf32>
    %144 = vector.extract_strided_slice %141 {offsets = [0, 32], sizes = [2, 32], strides = [1, 1]} : vector<2x128xf32> to vector<2x32xf32>
    %145 = vector.extract_strided_slice %142 {offsets = [0, 64], sizes = [2, 32], strides = [1, 1]} : vector<2x128xf32> to vector<2x32xf32>
    %146 = vector.extract_strided_slice %141 {offsets = [0, 96], sizes = [2, 32], strides = [1, 1]} : vector<2x128xf32> to vector<2x32xf32>
    %147 = arith.mulf %144, %127 : vector<2x32xf32>
    %148 = arith.mulf %143, %145 : vector<2x32xf32>
    %149 = arith.addf %147, %148 : vector<2x32xf32>
    %150 = math.tanh %149 : vector<2x32xf32>
    %151 = arith.mulf %146, %150 : vector<2x32xf32>
    %152 = arith.index_cast %131 : i32 to index
    %c0_41 = arith.constant 0 : index
    %153 = vector.load %arg1[%152, %c0_41] : memref<16x1xf32, #tpu.memory_space<vmem>>, vector<2x1xf32>
    %154 = vector.broadcast %153 : vector<2x1xf32> to vector<2x32xf32>
    %155 = arith.mulf %154, %151 : vector<2x32xf32>
    %cst_42 = arith.constant 1.000000e+00 : f32
    %156 = vector.broadcast %cst_42 : f32 to vector<2x1xf32>
    %157 = arith.subf %156, %153 : vector<2x1xf32>
    %158 = vector.broadcast %157 : vector<2x1xf32> to vector<2x32xf32>
    %159 = arith.mulf %158, %120 : vector<2x32xf32>
    %160 = arith.addf %155, %159 : vector<2x32xf32>
    %161 = vector.broadcast %153 : vector<2x1xf32> to vector<2x32xf32>
    %162 = arith.mulf %161, %149 : vector<2x32xf32>
    %cst_43 = arith.constant 1.000000e+00 : f32
    %163 = vector.broadcast %cst_43 : f32 to vector<2x1xf32>
    %164 = arith.subf %163, %153 : vector<2x1xf32>
    %165 = vector.broadcast %164 : vector<2x1xf32> to vector<2x32xf32>
    %166 = arith.mulf %165, %127 : vector<2x32xf32>
    %167 = arith.addf %162, %166 : vector<2x32xf32>
    %168 = arith.index_cast %131 : i32 to index
    %c0_44 = arith.constant 0 : index
    %169 = vector.load %arg7[%168, %c0_44] : memref<16x32xf32, #tpu.memory_space<vmem>>, vector<2x32xf32>
    tpu.vector_store %arg7[%168, %c0_44], %160 {strides = array<i32>} : memref<16x32xf32, #tpu.memory_space<vmem>>, vector<2x32xf32>,
    %c4_i32 = arith.constant 4 : i32
    %c2_i32_45 = arith.constant 2 : i32
    %170 = arith.muli %c4_i32, %c2_i32_45 : i32
    %171 = tpu.assume_multiple %170, 2 : i32
    %172 = arith.index_cast %171 : i32 to index
    %c0_46 = arith.constant 0 : index
    %173 = vector.load %arg10[%172, %c0_46] : memref<16x128xf32, #tpu.memory_space<vmem>>, vector<2x128xf32>
    %174 = arith.truncf %160 : vector<2x32xf32> to vector<2x32xbf16>
    %cst_47 = arith.constant dense<0.000000e+00> : vector<2x128xf32>
    %175 = tpu.matmul %174, %7, %cst_47 {dimension_numbers = #tpu.dot_dimension_numbers<[1], [0], [0], [1], [0, 0, 1, 1], [], []>} : vector<2x32xbf16>, vector<32x128xbf16>, vector<2x128xf32> -> vector<2x128xf32>
    %176 = arith.addf %173, %175 : vector<2x128xf32>
    %177 = arith.negf %176 : vector<2x128xf32>
    %178 = math.exp %177 : vector<2x128xf32>
    %cst_48 = arith.constant 1.000000e+00 : f32
    %179 = vector.broadcast %cst_48 : f32 to vector<2x128xf32>
    %180 = arith.addf %179, %178 : vector<2x128xf32>
    %181 = arith.divf %179, %180 : vector<2x128xf32>
    %182 = math.tanh %176 : vector<2x128xf32>
    %183 = vector.extract_strided_slice %181 {offsets = [0, 0], sizes = [2, 32], strides = [1, 1]} : vector<2x128xf32> to vector<2x32xf32>
    %184 = vector.extract_strided_slice %181 {offsets = [0, 32], sizes = [2, 32], strides = [1, 1]} : vector<2x128xf32> to vector<2x32xf32>
    %185 = vector.extract_strided_slice %182 {offsets = [0, 64], sizes = [2, 32], strides = [1, 1]} : vector<2x128xf32> to vector<2x32xf32>
    %186 = vector.extract_strided_slice %181 {offsets = [0, 96], sizes = [2, 32], strides = [1, 1]} : vector<2x128xf32> to vector<2x32xf32>
    %187 = arith.mulf %184, %167 : vector<2x32xf32>
    %188 = arith.mulf %183, %185 : vector<2x32xf32>
    %189 = arith.addf %187, %188 : vector<2x32xf32>
    %190 = math.tanh %189 : vector<2x32xf32>
    %191 = arith.mulf %186, %190 : vector<2x32xf32>
    %192 = arith.index_cast %171 : i32 to index
    %c0_49 = arith.constant 0 : index
    %193 = vector.load %arg1[%192, %c0_49] : memref<16x1xf32, #tpu.memory_space<vmem>>, vector<2x1xf32>
    %194 = vector.broadcast %193 : vector<2x1xf32> to vector<2x32xf32>
    %195 = arith.mulf %194, %191 : vector<2x32xf32>
    %cst_50 = arith.constant 1.000000e+00 : f32
    %196 = vector.broadcast %cst_50 : f32 to vector<2x1xf32>
    %197 = arith.subf %196, %193 : vector<2x1xf32>
    %198 = vector.broadcast %197 : vector<2x1xf32> to vector<2x32xf32>
    %199 = arith.mulf %198, %160 : vector<2x32xf32>
    %200 = arith.addf %195, %199 : vector<2x32xf32>
    %201 = vector.broadcast %193 : vector<2x1xf32> to vector<2x32xf32>
    %202 = arith.mulf %201, %189 : vector<2x32xf32>
    %cst_51 = arith.constant 1.000000e+00 : f32
    %203 = vector.broadcast %cst_51 : f32 to vector<2x1xf32>
    %204 = arith.subf %203, %193 : vector<2x1xf32>
    %205 = vector.broadcast %204 : vector<2x1xf32> to vector<2x32xf32>
    %206 = arith.mulf %205, %167 : vector<2x32xf32>
    %207 = arith.addf %202, %206 : vector<2x32xf32>
    %208 = arith.index_cast %171 : i32 to index
    %c0_52 = arith.constant 0 : index
    %209 = vector.load %arg7[%208, %c0_52] : memref<16x32xf32, #tpu.memory_space<vmem>>, vector<2x32xf32>
    tpu.vector_store %arg7[%208, %c0_52], %200 {strides = array<i32>} : memref<16x32xf32, #tpu.memory_space<vmem>>, vector<2x32xf32>,
    %c5_i32 = arith.constant 5 : i32
    %c2_i32_53 = arith.constant 2 : i32
    %210 = arith.muli %c5_i32, %c2_i32_53 : i32
    %211 = tpu.assume_multiple %210, 2 : i32
    %212 = arith.index_cast %211 : i32 to index
    %c0_54 = arith.constant 0 : index
    %213 = vector.load %arg10[%212, %c0_54] : memref<16x128xf32, #tpu.memory_space<vmem>>, vector<2x128xf32>
    %214 = arith.truncf %200 : vector<2x32xf32> to vector<2x32xbf16>
    %cst_55 = arith.constant dense<0.000000e+00> : vector<2x128xf32>
    %215 = tpu.matmul %214, %7, %cst_55 {dimension_numbers = #tpu.dot_dimension_numbers<[1], [0], [0], [1], [0, 0, 1, 1], [], []>} : vector<2x32xbf16>, vector<32x128xbf16>, vector<2x128xf32> -> vector<2x128xf32>
    %216 = arith.addf %213, %215 : vector<2x128xf32>
    %217 = arith.negf %216 : vector<2x128xf32>
    %218 = math.exp %217 : vector<2x128xf32>
    %cst_56 = arith.constant 1.000000e+00 : f32
    %219 = vector.broadcast %cst_56 : f32 to vector<2x128xf32>
    %220 = arith.addf %219, %218 : vector<2x128xf32>
    %221 = arith.divf %219, %220 : vector<2x128xf32>
    %222 = math.tanh %216 : vector<2x128xf32>
    %223 = vector.extract_strided_slice %221 {offsets = [0, 0], sizes = [2, 32], strides = [1, 1]} : vector<2x128xf32> to vector<2x32xf32>
    %224 = vector.extract_strided_slice %221 {offsets = [0, 32], sizes = [2, 32], strides = [1, 1]} : vector<2x128xf32> to vector<2x32xf32>
    %225 = vector.extract_strided_slice %222 {offsets = [0, 64], sizes = [2, 32], strides = [1, 1]} : vector<2x128xf32> to vector<2x32xf32>
    %226 = vector.extract_strided_slice %221 {offsets = [0, 96], sizes = [2, 32], strides = [1, 1]} : vector<2x128xf32> to vector<2x32xf32>
    %227 = arith.mulf %224, %207 : vector<2x32xf32>
    %228 = arith.mulf %223, %225 : vector<2x32xf32>
    %229 = arith.addf %227, %228 : vector<2x32xf32>
    %230 = math.tanh %229 : vector<2x32xf32>
    %231 = arith.mulf %226, %230 : vector<2x32xf32>
    %232 = arith.index_cast %211 : i32 to index
    %c0_57 = arith.constant 0 : index
    %233 = vector.load %arg1[%232, %c0_57] : memref<16x1xf32, #tpu.memory_space<vmem>>, vector<2x1xf32>
    %234 = vector.broadcast %233 : vector<2x1xf32> to vector<2x32xf32>
    %235 = arith.mulf %234, %231 : vector<2x32xf32>
    %cst_58 = arith.constant 1.000000e+00 : f32
    %236 = vector.broadcast %cst_58 : f32 to vector<2x1xf32>
    %237 = arith.subf %236, %233 : vector<2x1xf32>
    %238 = vector.broadcast %237 : vector<2x1xf32> to vector<2x32xf32>
    %239 = arith.mulf %238, %200 : vector<2x32xf32>
    %240 = arith.addf %235, %239 : vector<2x32xf32>
    %241 = vector.broadcast %233 : vector<2x1xf32> to vector<2x32xf32>
    %242 = arith.mulf %241, %229 : vector<2x32xf32>
    %cst_59 = arith.constant 1.000000e+00 : f32
    %243 = vector.broadcast %cst_59 : f32 to vector<2x1xf32>
    %244 = arith.subf %243, %233 : vector<2x1xf32>
    %245 = vector.broadcast %244 : vector<2x1xf32> to vector<2x32xf32>
    %246 = arith.mulf %245, %207 : vector<2x32xf32>
    %247 = arith.addf %242, %246 : vector<2x32xf32>
    %248 = arith.index_cast %211 : i32 to index
    %c0_60 = arith.constant 0 : index
    %249 = vector.load %arg7[%248, %c0_60] : memref<16x32xf32, #tpu.memory_space<vmem>>, vector<2x32xf32>
    tpu.vector_store %arg7[%248, %c0_60], %240 {strides = array<i32>} : memref<16x32xf32, #tpu.memory_space<vmem>>, vector<2x32xf32>,
    %c6_i32 = arith.constant 6 : i32
    %c2_i32_61 = arith.constant 2 : i32
    %250 = arith.muli %c6_i32, %c2_i32_61 : i32
    %251 = tpu.assume_multiple %250, 2 : i32
    %252 = arith.index_cast %251 : i32 to index
    %c0_62 = arith.constant 0 : index
    %253 = vector.load %arg10[%252, %c0_62] : memref<16x128xf32, #tpu.memory_space<vmem>>, vector<2x128xf32>
    %254 = arith.truncf %240 : vector<2x32xf32> to vector<2x32xbf16>
    %cst_63 = arith.constant dense<0.000000e+00> : vector<2x128xf32>
    %255 = tpu.matmul %254, %7, %cst_63 {dimension_numbers = #tpu.dot_dimension_numbers<[1], [0], [0], [1], [0, 0, 1, 1], [], []>} : vector<2x32xbf16>, vector<32x128xbf16>, vector<2x128xf32> -> vector<2x128xf32>
    %256 = arith.addf %253, %255 : vector<2x128xf32>
    %257 = arith.negf %256 : vector<2x128xf32>
    %258 = math.exp %257 : vector<2x128xf32>
    %cst_64 = arith.constant 1.000000e+00 : f32
    %259 = vector.broadcast %cst_64 : f32 to vector<2x128xf32>
    %260 = arith.addf %259, %258 : vector<2x128xf32>
    %261 = arith.divf %259, %260 : vector<2x128xf32>
    %262 = math.tanh %256 : vector<2x128xf32>
    %263 = vector.extract_strided_slice %261 {offsets = [0, 0], sizes = [2, 32], strides = [1, 1]} : vector<2x128xf32> to vector<2x32xf32>
    %264 = vector.extract_strided_slice %261 {offsets = [0, 32], sizes = [2, 32], strides = [1, 1]} : vector<2x128xf32> to vector<2x32xf32>
    %265 = vector.extract_strided_slice %262 {offsets = [0, 64], sizes = [2, 32], strides = [1, 1]} : vector<2x128xf32> to vector<2x32xf32>
    %266 = vector.extract_strided_slice %261 {offsets = [0, 96], sizes = [2, 32], strides = [1, 1]} : vector<2x128xf32> to vector<2x32xf32>
    %267 = arith.mulf %264, %247 : vector<2x32xf32>
    %268 = arith.mulf %263, %265 : vector<2x32xf32>
    %269 = arith.addf %267, %268 : vector<2x32xf32>
    %270 = math.tanh %269 : vector<2x32xf32>
    %271 = arith.mulf %266, %270 : vector<2x32xf32>
    %272 = arith.index_cast %251 : i32 to index
    %c0_65 = arith.constant 0 : index
    %273 = vector.load %arg1[%272, %c0_65] : memref<16x1xf32, #tpu.memory_space<vmem>>, vector<2x1xf32>
    %274 = vector.broadcast %273 : vector<2x1xf32> to vector<2x32xf32>
    %275 = arith.mulf %274, %271 : vector<2x32xf32>
    %cst_66 = arith.constant 1.000000e+00 : f32
    %276 = vector.broadcast %cst_66 : f32 to vector<2x1xf32>
    %277 = arith.subf %276, %273 : vector<2x1xf32>
    %278 = vector.broadcast %277 : vector<2x1xf32> to vector<2x32xf32>
    %279 = arith.mulf %278, %240 : vector<2x32xf32>
    %280 = arith.addf %275, %279 : vector<2x32xf32>
    %281 = vector.broadcast %273 : vector<2x1xf32> to vector<2x32xf32>
    %282 = arith.mulf %281, %269 : vector<2x32xf32>
    %cst_67 = arith.constant 1.000000e+00 : f32
    %283 = vector.broadcast %cst_67 : f32 to vector<2x1xf32>
    %284 = arith.subf %283, %273 : vector<2x1xf32>
    %285 = vector.broadcast %284 : vector<2x1xf32> to vector<2x32xf32>
    %286 = arith.mulf %285, %247 : vector<2x32xf32>
    %287 = arith.addf %282, %286 : vector<2x32xf32>
    %288 = arith.index_cast %251 : i32 to index
    %c0_68 = arith.constant 0 : index
    %289 = vector.load %arg7[%288, %c0_68] : memref<16x32xf32, #tpu.memory_space<vmem>>, vector<2x32xf32>
    tpu.vector_store %arg7[%288, %c0_68], %280 {strides = array<i32>} : memref<16x32xf32, #tpu.memory_space<vmem>>, vector<2x32xf32>,
    %c7_i32 = arith.constant 7 : i32
    %c2_i32_69 = arith.constant 2 : i32
    %290 = arith.muli %c7_i32, %c2_i32_69 : i32
    %291 = tpu.assume_multiple %290, 2 : i32
    %292 = arith.index_cast %291 : i32 to index
    %c0_70 = arith.constant 0 : index
    %293 = vector.load %arg10[%292, %c0_70] : memref<16x128xf32, #tpu.memory_space<vmem>>, vector<2x128xf32>
    %294 = arith.truncf %280 : vector<2x32xf32> to vector<2x32xbf16>
    %cst_71 = arith.constant dense<0.000000e+00> : vector<2x128xf32>
    %295 = tpu.matmul %294, %7, %cst_71 {dimension_numbers = #tpu.dot_dimension_numbers<[1], [0], [0], [1], [0, 0, 1, 1], [], []>} : vector<2x32xbf16>, vector<32x128xbf16>, vector<2x128xf32> -> vector<2x128xf32>
    %296 = arith.addf %293, %295 : vector<2x128xf32>
    %297 = arith.negf %296 : vector<2x128xf32>
    %298 = math.exp %297 : vector<2x128xf32>
    %cst_72 = arith.constant 1.000000e+00 : f32
    %299 = vector.broadcast %cst_72 : f32 to vector<2x128xf32>
    %300 = arith.addf %299, %298 : vector<2x128xf32>
    %301 = arith.divf %299, %300 : vector<2x128xf32>
    %302 = math.tanh %296 : vector<2x128xf32>
    %303 = vector.extract_strided_slice %301 {offsets = [0, 0], sizes = [2, 32], strides = [1, 1]} : vector<2x128xf32> to vector<2x32xf32>
    %304 = vector.extract_strided_slice %301 {offsets = [0, 32], sizes = [2, 32], strides = [1, 1]} : vector<2x128xf32> to vector<2x32xf32>
    %305 = vector.extract_strided_slice %302 {offsets = [0, 64], sizes = [2, 32], strides = [1, 1]} : vector<2x128xf32> to vector<2x32xf32>
    %306 = vector.extract_strided_slice %301 {offsets = [0, 96], sizes = [2, 32], strides = [1, 1]} : vector<2x128xf32> to vector<2x32xf32>
    %307 = arith.mulf %304, %287 : vector<2x32xf32>
    %308 = arith.mulf %303, %305 : vector<2x32xf32>
    %309 = arith.addf %307, %308 : vector<2x32xf32>
    %310 = math.tanh %309 : vector<2x32xf32>
    %311 = arith.mulf %306, %310 : vector<2x32xf32>
    %312 = arith.index_cast %291 : i32 to index
    %c0_73 = arith.constant 0 : index
    %313 = vector.load %arg1[%312, %c0_73] : memref<16x1xf32, #tpu.memory_space<vmem>>, vector<2x1xf32>
    %314 = vector.broadcast %313 : vector<2x1xf32> to vector<2x32xf32>
    %315 = arith.mulf %314, %311 : vector<2x32xf32>
    %cst_74 = arith.constant 1.000000e+00 : f32
    %316 = vector.broadcast %cst_74 : f32 to vector<2x1xf32>
    %317 = arith.subf %316, %313 : vector<2x1xf32>
    %318 = vector.broadcast %317 : vector<2x1xf32> to vector<2x32xf32>
    %319 = arith.mulf %318, %280 : vector<2x32xf32>
    %320 = arith.addf %315, %319 : vector<2x32xf32>
    %321 = vector.broadcast %313 : vector<2x1xf32> to vector<2x32xf32>
    %322 = arith.mulf %321, %309 : vector<2x32xf32>
    %cst_75 = arith.constant 1.000000e+00 : f32
    %323 = vector.broadcast %cst_75 : f32 to vector<2x1xf32>
    %324 = arith.subf %323, %313 : vector<2x1xf32>
    %325 = vector.broadcast %324 : vector<2x1xf32> to vector<2x32xf32>
    %326 = arith.mulf %325, %287 : vector<2x32xf32>
    %327 = arith.addf %322, %326 : vector<2x32xf32>
    %328 = arith.index_cast %291 : i32 to index
    %c0_76 = arith.constant 0 : index
    %329 = vector.load %arg7[%328, %c0_76] : memref<16x32xf32, #tpu.memory_space<vmem>>, vector<2x32xf32>
    tpu.vector_store %arg7[%328, %c0_76], %320 {strides = array<i32>} : memref<16x32xf32, #tpu.memory_space<vmem>>, vector<2x32xf32>,
    %c8_i32 = arith.constant 8 : i32
    %c0_77 = arith.constant 0 : index
    %c0_78 = arith.constant 0 : index
    %330 = vector.load %arg8[%c0_77, %c0_78] : memref<2x32xf32, #tpu.memory_space<vmem>>, vector<2x32xf32>
    tpu.vector_store %arg8[%c0_77, %c0_78], %320 {strides = array<i32>} : memref<2x32xf32, #tpu.memory_space<vmem>>, vector<2x32xf32>,
    %c0_79 = arith.constant 0 : index
    %c0_80 = arith.constant 0 : index
    %331 = vector.load %arg9[%c0_79, %c0_80] : memref<2x32xf32, #tpu.memory_space<vmem>>, vector<2x32xf32>
    tpu.vector_store %arg9[%c0_79, %c0_80], %327 {strides = array<i32>} : memref<2x32xf32, #tpu.memory_space<vmem>>, vector<2x32xf32>,
    return
  }
}

</mosaic_0001>

<bundles_post_ra>
// kernel: tpu_custom_call.1
= control target key start
LH: loop header
LB: loop body
LE: loop exit
PB: predicated region body
PF: predicated region fallthrough
CT: control target
= control target key end

     0   :  { %15 = vsyncpa [#allocation4], 0  ;;  %s1695_s0 = inlined_call_operand.hbm [shape: bf16[16,48], index: 0, kind: input, shape index: {}]   ;;  %s1696_s1 = inlined_call_operand.vmem [shape: f32[16,1], index: 1, kind: input, shape index: {}]   ;;  %s1697_s2 = inlined_call_operand.hbm [shape: f32[2,32], index: 2, kind: input, shape index: {}]   ;;  %s1698_s3 = inlined_call_operand.hbm [shape: f32[2,32], index: 3, kind: input, shape index: {}]   ;;  %s1699_s4 = inlined_call_operand.vmem [shape: bf16[48,128], index: 4, kind: input, shape index: {}]   ;;  %s1700_s5 = inlined_call_operand.hbm [shape: bf16[32,128], index: 5, kind: input, shape index: {}]   ;;  %s1701_s6 = inlined_call_operand.vmem [shape: f32[1,128], index: 6, kind: input, shape index: {}]   ;;  %s1702_s7 = inlined_call_operand.hbm [shape: f32[16,32], index: 7, kind: output, shape index: {0}]   ;;  %s1703_s8 = inlined_call_operand.hbm [shape: f32[2,32], index: 8, kind: output, shape index: {1}]   ;;  %s1704_s9 = inlined_call_operand.hbm [shape: f32[2,32], index: 9, kind: output, shape index: {2}]  }
   0x1   :  { %16 = vsyncpa [#allocation7], 0 }
   0x2   :  { %17 = vsyncpa [#allocation10], 0 }
   0x3   :  { %18 = vsyncpa [#allocation5], 0 }
   0x4   :  { %19 = vsyncpa [#allocation13], 0  ;;  %s1409_s30 = smov [#allocation6]   ;;  %s1410_s11 = smov [#allocation3]  }
   0x5   :  { %s40_s10 = sshll.u32 %s1409_s30, 4  ;;  %s25_s12 = sshll.u32 %s1410_s11, 4  ;;  %s41_s10 = int_to_ptr.vmem [resolvable:$true] %s40_s10  ;;  %s26_s12 = int_to_ptr.vmem [resolvable:$true] %s25_s12 }
   0x6   :  { %s1267_s13 = scalar_lea.vmem %s41_s10, 32  ;;  %p1272_p1 = scmp.lt.s32.totalorder %s41_s10, %s41_s10 }
   0x7   :  { %p1268_p0 = scmp.ne.s32.totalorder %s41_s10, %s1267_s13  ;;  %p1273_p2 = scmp.lt.s32.totalorder %s1267_s13, %s1267_s13 }
   0x9   :  { %p1274_p3 = por %p1273_p2, %p1272_p1 }
   0xb   :  { %p1275_p4 = pnand %p1274_p3, %p1268_p0 }
   0xd   :  { %1278 = shalt.err (!%p1275_p4)
}
   0xe   :  { %43 = dma.hbm_to_vmem [thread:$0]  %s1697_s2, 32, %s41_s10, [#allocation7]  }
   0xf   :  { %s1287_s16 = scalar_lea.vmem %s26_s12, 128  ;;  %p1292_p6 = scmp.lt.s32.totalorder %s26_s12, %s26_s12 }
  0x10   :  { %p1288_p5 = scmp.ne.s32.totalorder %s26_s12, %s1287_s16  ;;  %p1293_p7 = scmp.lt.s32.totalorder %s1287_s16, %s1287_s16 }
  0x12   :  { %p1294_p8 = por %p1293_p7, %p1292_p6 }
  0x14   :  { %p1295_p9 = pnand %p1294_p8, %p1288_p5 }
  0x16   :  { %1298 = shalt.err (!%p1295_p9)
}
  0x17   :  { %s1411_s17 = smov 64   ;;  %s1412_s18 = smov 4  }
  0x18   :  { %31 = dma.hbm_to_vmem [thread:$0]  %s1695_s0, 128, %s26_s12, [#allocation4], %s1411_s17, %s1411_s17, %s1412_s18  }
  0x19   :  { %s1413_s21 = smov [#allocation8]   ;;  %s1414_s23 = smov [#allocation9]  }
  0x1a   :  { %s50_s22 = sshll.u32 %s1413_s21, 4  ;;  %s61_s24 = sshll.u32 %s1414_s23, 4  ;;  %s51_s22 = int_to_ptr.vmem [resolvable:$true] %s50_s22  ;;  %s62_s24 = int_to_ptr.vmem [resolvable:$true] %s61_s24 }
  0x1b   :  { %s1307_s2 = scalar_lea.vmem %s51_s22, 32  ;;  %p1312_p11 = scmp.lt.s32.totalorder %s51_s22, %s51_s22 }
  0x1c   :  { %p1308_p10 = scmp.ne.s32.totalorder %s51_s22, %s1307_s2  ;;  %p1313_p12 = scmp.lt.s32.totalorder %s1307_s2, %s1307_s2 }
  0x1e   :  { %p1314_p13 = por %p1313_p12, %p1312_p11 }
  0x20   :  { %p1315_p0 = pnand %p1314_p13, %p1308_p10 }
  0x22   :  { %1318 = shalt.err (!%p1315_p0)
}
  0x23   :  { %53 = dma.hbm_to_vmem [thread:$0]  %s1698_s3, 32, %s51_s22, [#allocation7]  }
  0x24   :  { %s1327_s27 = scalar_lea.vmem %s62_s24, 256  ;;  %p1332_p2 = scmp.lt.s32.totalorder %s62_s24, %s62_s24 }
  0x25   :  { %p1328_p1 = scmp.ne.s32.totalorder %s62_s24, %s1327_s27  ;;  %p1333_p3 = scmp.lt.s32.totalorder %s1327_s27, %s1327_s27 }
  0x27   :  { %p1334_p4 = por %p1333_p3, %p1332_p2 }
  0x29   :  { %p1335_p5 = pnand %p1334_p4, %p1328_p1 }
  0x2b   :  { %1338 = shalt.err (!%p1335_p5)
}
  0x2c   :  { %67 = dma.hbm_to_vmem [thread:$0]  %s1700_s5, 256, %s62_s24, [#allocation10], %s1411_s17, %s1411_s17, %s1412_s18  }
  0x2d   :  { %1399 = dma.done.wait [#allocation4], 128  }
  0x2e   :  { %1400 = vsyncadd [#allocation4], 4294967168 }
  0x2f   :  { %1401 = dma.done.wait [#allocation7], 64  }
  0x30   :  { %1402 = vsyncadd [#allocation7], 4294967232 }
  0x31   :  { %1403 = dma.done.wait [#allocation10], 256  }
  0x32   :  { %1404 = vsyncadd [#allocation10], 4294967040  ;;  %v1415_v0 = vmov 0.0   ;;  %vm1416_vm0 = vmmov 0   ;;  %v1189_v1 = vld [vmem:[%s1699_s4 + $0x10] sm:$0xff]   ;;  %v1190_v2 = vld [vmem:[%s1699_s4 + $0x8] sm:$0xff]  }
  0x33   :  { %1097 = vmatprep.subr.bf16.mxu0 %v1415_v0  ;;  %1107 = vmatprep.subr.bf16.mxu1 %v1415_v0  ;;  %v1504_v3 = vld [vmem:[#allocation9 + $0x8] sm:$0xff]   ;;  %v1507_v4 = vld [vmem:[#allocation9] sm:$0xff]   ;;  %v1513_v6 = vld [vmem:[#allocation6] sm:$0x3]  ;;  %vm188_vm1 = vcmask 261120   ;;  %vm121_vm2 = vcmask 392192  }
  0x34   :  { %1103 = vmatprep.mubr.msk.bf16.mxu0 %vm1416_vm0, %v1415_v0  ;;  %1111 = vmatprep.mubr.msk.bf16.mxu1 %vm1416_vm0, %v1415_v0  ;;  %v1191_v5 = vld [vmem:[%s1699_s4] sm:$0xff]   ;;  %v175_v7 = vpack.c.bf16 %v1513_v6, %v1513_v6  ;;  %v1193_v8 = vld [vmem:[#allocation3] sm:$0xff]   ;;  %v1417_v9 = vmov 0   ;;  %v173_v24 = vld [vmem:[#allocation8] sm:$0x3]  ;;  %s1419_s15 = smov 96  }
  0x35   :  { %1098 = vmatpush3.bf16.msra.mxu0 %v1189_v1  ;;  %1108 = vmatpush3.bf16.msra.mxu1 %v1504_v3  ;;  %v1038_v10 = vld [vmem:[%s1701_s6] ss:$0 sm:$0xff]  ;;  %s1418_s6 = smov 32   ;;  %v1050_v48 = vld [vmem:[%s1696_s1 + $0x2] sm:$0x3]  ;;  %vm291_vm3 = vcmask 254976  }
  0x36   :  { %1099 = vmatprep.subr.bf16.mxu0 %v1415_v0  ;;  %1109 = vmatprep.subr.bf16.mxu1 %v1415_v0  ;;  %v261_v25 = vld [vmem:[%s1696_s1] sm:$0x3]  ;;  %v375_v63 = vsub.f32 1.0, %v1050_v48  ;;  %s1421_s3 = smov [#allocation11]   ;;  %s1422_s29 = smov [#allocation14]  }
  0x37   :  { %1188 = vset.pattern.permute.xlu0 %v1417_v9  ;;  %1187 = vset.pattern.permute.xlu1 %v1417_v9  ;;  %v268_v32 = vsub.f32 1.0, %v261_v25  ;;  %s997_s5 = sshll.u32 %s1421_s3, 4  ;;  %s1020_s30 = sshll.u32 %s1422_s29, 4  ;;  %s998_s5 = int_to_ptr.vmem [resolvable:$true] %s997_s5  ;;  %s1021_s30 = int_to_ptr.vmem [resolvable:$true] %s1020_s30 }
  0x39   :  { %1100 = vmatpush3.bf16.msra.mxu0 %v1190_v2  ;;  %1110 = vmatpush3.bf16.msra.mxu1 %v1507_v4 }
  0x3a   :  { %1101 = vmatprep.subr.bf16.mxu0 %v1415_v0  ;;  %1115 = vmatprep.subr.bf16.mxu1 %v1415_v0 }
  0x3c   :  { %1112 = vmatmul.mubr.msk.bf16.vlgmr.msra.gmra.mxu1 %vm188_vm1, %v175_v7 }
  0x3d   :  { %1102 = vmatpush3.bf16.msra.mxu0 %v1191_v5  ;;  %1116 = vmatpush3.bf16.msra.mxu1 %v1504_v3 }
  0x3e   :  { %1123 = vmatprep.subr.bf16.mxu0 %v1415_v0  ;;  %1117 = vmatprep.subr.bf16.mxu1 %v1415_v0 }
  0x3f   :  { %1119 = vmatprep.mubr.msk.bf16.mxu1 %vm1416_vm0, %v1415_v0 }
  0x40   :  { %1104 = vmatmul.mubr.msk.bf16.vlgmr.msra.gmra.mxu0 %vm121_vm2, %v1193_v8 }
  0x41   :  { %1124 = vmatpush3.bf16.msra.mxu0 %v1504_v3  ;;  %1127 = vmatprep.mubr.msk.bf16.mxu0 %vm1416_vm0, %v1415_v0 }
  0x42   :  { %1125 = vmatprep.subr.bf16.mxu0 %v1415_v0  ;;  %1118 = vmatpush3.bf16.msra.mxu1 %v1507_v4 }
  0x43   :  { %1131 = vmatprep.subr.bf16.mxu1 %v1415_v0 }
  0x45   :  { %1126 = vmatpush3.bf16.msra.mxu0 %v1507_v4 }
  0x46   :  { %1139 = vmatprep.subr.bf16.mxu0 %v1415_v0 }
  0xfc   :  { %v226_v11 = vpop.f32.mrf.mxu1 }
  0xfe   :  { %v1113_v14 = vpop.f32.mrf.mxu1 }
 0x100   :  { %v159_v12 = vpop.f32.mrf.mxu0  ;;  %v229_v16 = vpop.f32.mrf.mxu1 }
 0x101   :  { %v160_v13 = vadd.f32 %v1038_v10, %v159_v12 }
 0x102   :  { %v1105_v15 = vpop.f32.mrf.mxu0  ;;  %v1114_v19 = vpop.f32.mrf.mxu1 }
 0x103   :  { %166 = vst [vmem:[#allocation2] sm:$0xff] %v160_v13 }
 0x104   :  { %v162_v17 = vpop.f32.mrf.mxu0 }
 0x105   :  { %v163_v18 = vadd.f32 %v1038_v10, %v162_v17 }
 0x106   :  { %v1106_v20 = vpop.f32.mrf.mxu0 }
 0x107   :  { %167 = vst [vmem:[#allocation2 + $0x8] sm:$0xff] %v163_v18 }
 0x10a   :  { %v174_v21 = vld [vmem:[#allocation2] sm:$0x3]  ;;  %v294_v50 = vld [vmem:[#allocation2 + $0x2] sm:$0x3]  ;;  %v393_v19 = vld [vmem:[#allocation2 + $0x4] sm:$0x3] }
 0x10b   :  { %v232_v22 = vadd.f32 %v226_v11, %v174_v21 }
 0x10d   :  { %1195 = vtanh.f32 %v232_v22  ;;  %v1047_v26 = vmul.f32 -1.442695, %v232_v22 }
 0x10f   :  { %1197 = vpow2.f32 %v1047_v26  ;;  %v1053_v26 = vld [vmem:[%s1696_s1 + $0x4] sm:$0x3] }
 0x11a   :  { %v1196_v23 = vpop.eup %1195 }
 0x11b   :  { %246 = vrot.lane.b32.xlu0 %v1196_v23, %s1411_s17 }
 0x11c   :  { %v1198_v27 = vpop.eup %1197 }
 0x11d   :  { %v236_v28 = vadd.f32 1.0, %v1198_v27 }
 0x11f   :  { %241 = vrot.lane.b32.xlu0 %v173_v24, %s1418_s6  ;;  %1199 = vrcp.f32 %v236_v28 }
 0x123   :  { %264 = vperm.xlu0 %1188, %v261_v25  }
 0x12c   :  { %v1200_v29 = vpop.eup %1199 }
 0x18d   :  { %v247_v30 = vpop.permute.xlu0 %246 }
 0x18e   :  { %v249_v31 = vmul.f32 %v1200_v29, %v247_v30 }
 0x190   :  { %251 = vrot.lane.b32.xlu1 %v249_v31, %s1418_s6 }
 0x191   :  { %v242_v33 = vpop.permute.xlu0 %241 }
 0x192   :  { %v244_v34 = vmul.f32 %v1200_v29, %v242_v33  ;;  %v474_v33 = vsub.f32 1.0, %v1053_v26 }
 0x194   :  { %271 = vperm.xlu1 %1187, %v268_v32  }
 0x19e   :  { %v265_v42 = vpop.permute.xlu0 %264 }
 0x202   :  { %v252_v35 = vpop.permute.xlu1 %251 }
 0x203   :  { %v254_v36 = vadd.f32 %v252_v35, %v244_v34 }
 0x205   :  { %1201 = vtanh.f32 %v254_v36  ;;  %v280_v2 = vmul.f32 %v265_v42, %v254_v36 }
 0x20f   :  { %v272_v37 = vpop.permute.xlu1 %271 }
 0x210   :  { %v274_v39 = vmul.f32 %v272_v37, %v1513_v6  ;;  %v281_v47 = vmul.f32 %v272_v37, %v173_v24 }
 0x212   :  { %v1202_v38 = vpop.eup %1201 }
 0x213   :  { %257 = vrot.lane.b32.xlu1 %v1202_v38, %s1411_s17 }
 0x217   :  { %276 = vrot.lane.b32.xlu1 %v274_v39, %s1419_s15 }
 0x285   :  { %v258_v40 = vpop.permute.xlu1 %257 }
 0x286   :  { %v260_v41 = vmul.f32 %v1200_v29, %v258_v40 }
 0x288   :  { %v267_v43 = vmul.f32 %v265_v42, %v260_v41 }
 0x289   :  { %v277_v44 = vpop.permute.xlu1 %276 }
 0x28a   :  { %v1546_v45 = vadd.f32 %v277_v44, %v267_v43 }
 0x28c   :  { %v295_v46 = vpack.c.bf16 %v1546_v45, %v1546_v45 }
 0x28e   :  { %297 = vrot.lane.b32.xlu0 %v295_v46, %s1418_s6 }
 0x292   :  { %283 = vrot.lane.b32.xlu0 %v281_v47, %s1418_s6 }
 0x296   :  { %371 = vperm.xlu0 %1188, %v1050_v48  }
 0x300   :  { %v298_v49 = vpop.permute.xlu0 %297 }
 0x301   :  { %1120 = vmatmul.mubr.msk.bf16.vlgmr.msra.gmra.mxu1 %vm188_vm1, %v298_v49 }
 0x302   :  { %1132 = vmatpush3.bf16.msra.mxu1 %v1504_v3  ;;  %1135 = vmatprep.mubr.msk.bf16.mxu1 %vm1416_vm0, %v1415_v0 }
 0x303   :  { %1133 = vmatprep.subr.bf16.mxu1 %v1415_v0 }
 0x304   :  { %v284_v1 = vpop.permute.xlu0 %283 }
 0x305   :  { %v286_v5 = vadd.f32 %v284_v1, %v280_v2 }
 0x306   :  { %1134 = vmatpush3.bf16.msra.mxu1 %v1507_v4 }
 0x307   :  { %1147 = vmatprep.subr.bf16.mxu1 %v1415_v0 }
 0x311   :  { %v372_v10 = vpop.permute.xlu0 %371 }
 0x3c1   :  { %v336_v51 = vpop.f32.mrf.mxu1 }
 0x3c2   :  { %v342_v52 = vadd.f32 %v336_v51, %v294_v50  ;;  %v492_v51 = vld [vmem:[#allocation2 + $0x6] sm:$0x3] }
 0x3c3   :  { %v1121_v53 = vpop.f32.mrf.mxu1 }
 0x3c4   :  { %1203 = vtanh.f32 %v342_v52  ;;  %v1049_v57 = vmul.f32 -1.442695, %v342_v52 }
 0x3c5   :  { %v339_v54 = vpop.f32.mrf.mxu1 }
 0x3c6   :  { %1205 = vpow2.f32 %v1049_v57 }
 0x3c7   :  { %v1122_v55 = vpop.f32.mrf.mxu1 }
 0x3d1   :  { %v1204_v56 = vpop.eup %1203 }
 0x3d2   :  { %352 = vrot.lane.b32.xlu1 %v1204_v56, %s1411_s17 }
 0x3d3   :  { %v1206_v58 = vpop.eup %1205 }
 0x3d4   :  { %v346_v59 = vadd.f32 1.0, %v1206_v58  ;;  %v1056_v58 = vld [vmem:[%s1696_s1 + $0x6] sm:$0x3] }
 0x3d5   :  { %v573_v2 = vsub.f32 1.0, %v1056_v58 }
 0x3d6   :  { %1207 = vrcp.f32 %v346_v59 }
 0x3e3   :  { %v1208_v60 = vpop.eup %1207 }
 0x3e4   :  { %v350_v6 = vmul.f32 %v1208_v60, %v286_v5 }
 0x444   :  { %v353_v61 = vpop.permute.xlu1 %352 }
 0x445   :  { %v355_v62 = vmul.f32 %v1208_v60, %v353_v61 }
 0x447   :  { %357 = vrot.lane.b32.xlu1 %v355_v62, %s1418_s6 }
 0x44b   :  { %378 = vperm.xlu1 %1187, %v375_v63  }
 0x4b9   :  { %v358_v7 = vpop.permute.xlu1 %357 }
 0x4ba   :  { %v360_v8 = vadd.f32 %v358_v7, %v350_v6 }
 0x4bc   :  { %1209 = vtanh.f32 %v360_v8  ;;  %v383_v35 = vmul.f32 %v372_v10, %v360_v8 }
 0x4c6   :  { %v379_v11 = vpop.permute.xlu1 %378 }
 0x4c7   :  { %v381_v14 = vmul.f32 %v379_v11, %v1546_v45  ;;  %v384_v34 = vmul.f32 %v379_v11, %v286_v5 }
 0x4c9   :  { %v1210_v9 = vpop.eup %1209  ;;  %v385_v36 = vadd.f32 %v384_v34, %v383_v35 }
 0x4ca   :  { %363 = vrot.lane.b32.xlu0 %v1210_v9, %s1411_s17 }
 0x53c   :  { %v364_v12 = vpop.permute.xlu0 %363 }
 0x53d   :  { %v366_v13 = vmul.f32 %v1208_v60, %v364_v12 }
 0x53f   :  { %v374_v15 = vmul.f32 %v372_v10, %v366_v13 }
 0x541   :  { %v1566_v16 = vadd.f32 %v381_v14, %v374_v15 }
 0x543   :  { %v394_v17 = vpack.c.bf16 %v1566_v16, %v1566_v16 }
 0x545   :  { %396 = vrot.lane.b32.xlu1 %v394_v17, %s1418_s6 }
 0x5b7   :  { %v397_v18 = vpop.permute.xlu1 %396 }
 0x5b8   :  { %1128 = vmatmul.mubr.msk.bf16.vlgmr.msra.gmra.mxu0 %vm188_vm1, %v397_v18 }
 0x5b9   :  { %1140 = vmatpush3.bf16.msra.mxu0 %v1504_v3  ;;  %1143 = vmatprep.mubr.msk.bf16.mxu0 %vm1416_vm0, %v1415_v0 }
 0x5ba   :  { %1141 = vmatprep.subr.bf16.mxu0 %v1415_v0 }
 0x5bd   :  { %1142 = vmatpush3.bf16.msra.mxu0 %v1507_v4 }
 0x5be   :  { %1155 = vmatprep.subr.bf16.mxu0 %v1415_v0 }
 0x678   :  { %v435_v20 = vpop.f32.mrf.mxu0 }
 0x679   :  { %v441_v21 = vadd.f32 %v435_v20, %v393_v19 }
 0x67a   :  { %v1129_v22 = vpop.f32.mrf.mxu0 }
 0x67b   :  { %1211 = vtanh.f32 %v441_v21  ;;  %v1052_v27 = vmul.f32 -1.442695, %v441_v21  ;;  %v591_v22 = vld [vmem:[#allocation2 + $0x8] sm:$0x3] }
 0x67c   :  { %v438_v23 = vpop.f32.mrf.mxu0 }
 0x67d   :  { %1213 = vpow2.f32 %v1052_v27 }
 0x67e   :  { %v1130_v24 = vpop.f32.mrf.mxu0 }
 0x688   :  { %v1212_v25 = vpop.eup %1211 }
 0x689   :  { %451 = vrot.lane.b32.xlu0 %v1212_v25, %s1411_s17 }
 0x68a   :  { %v1214_v28 = vpop.eup %1213 }
 0x68b   :  { %v445_v29 = vadd.f32 1.0, %v1214_v28 }
 0x68d   :  { %470 = vperm.xlu0 %1188, %v1053_v26   ;;  %1215 = vrcp.f32 %v445_v29  ;;  %v1059_v29 = vld [vmem:[%s1696_s1 + $0x8] sm:$0x3] }
 0x69a   :  { %v1216_v30 = vpop.eup %1215 }
 0x69b   :  { %v449_v37 = vmul.f32 %v1216_v30, %v385_v36 }
 0x6fb   :  { %v452_v31 = vpop.permute.xlu0 %451 }
 0x6fc   :  { %v454_v32 = vmul.f32 %v1216_v30, %v452_v31 }
 0x6fe   :  { %456 = vrot.lane.b32.xlu1 %v454_v32, %s1418_s6 }
 0x702   :  { %477 = vperm.xlu1 %1187, %v474_v33  }
 0x708   :  { %v471_v41 = vpop.permute.xlu0 %470 }
 0x770   :  { %v457_v38 = vpop.permute.xlu1 %456 }
 0x771   :  { %v459_v39 = vadd.f32 %v457_v38, %v449_v37 }
 0x773   :  { %1217 = vtanh.f32 %v459_v39  ;;  %v482_v6 = vmul.f32 %v471_v41, %v459_v39 }
 0x77d   :  { %v478_v42 = vpop.permute.xlu1 %477 }
 0x77e   :  { %v480_v46 = vmul.f32 %v478_v42, %v1566_v16  ;;  %v483_v5 = vmul.f32 %v478_v42, %v385_v36  ;;  %v672_v36 = vsub.f32 1.0, %v1059_v29 }
 0x780   :  { %v1218_v40 = vpop.eup %1217  ;;  %v484_v7 = vadd.f32 %v483_v5, %v482_v6 }
 0x781   :  { %462 = vrot.lane.b32.xlu0 %v1218_v40, %s1411_s17 }
 0x7f3   :  { %v463_v43 = vpop.permute.xlu0 %462 }
 0x7f4   :  { %v465_v44 = vmul.f32 %v1216_v30, %v463_v43 }
 0x7f6   :  { %v473_v47 = vmul.f32 %v471_v41, %v465_v44 }
 0x7f8   :  { %v1585_v48 = vadd.f32 %v480_v46, %v473_v47 }
 0x7fa   :  { %v493_v49 = vpack.c.bf16 %v1585_v48, %v1585_v48 }
 0x7fc   :  { %495 = vrot.lane.b32.xlu1 %v493_v49, %s1418_s6 }
 0x86e   :  { %v496_v50 = vpop.permute.xlu1 %495 }
 0x86f   :  { %1136 = vmatmul.mubr.msk.bf16.vlgmr.msra.gmra.mxu1 %vm188_vm1, %v496_v50 }
 0x870   :  { %1148 = vmatpush3.bf16.msra.mxu1 %v1504_v3  ;;  %1151 = vmatprep.mubr.msk.bf16.mxu1 %vm1416_vm0, %v1415_v0 }
 0x871   :  { %1149 = vmatprep.subr.bf16.mxu1 %v1415_v0 }
 0x874   :  { %1150 = vmatpush3.bf16.msra.mxu1 %v1507_v4 }
 0x875   :  { %1163 = vmatprep.subr.bf16.mxu1 %v1415_v0 }
 0x92f   :  { %v534_v52 = vpop.f32.mrf.mxu1 }
 0x930   :  { %v540_v53 = vadd.f32 %v534_v52, %v492_v51 }
 0x931   :  { %v1137_v54 = vpop.f32.mrf.mxu1 }
 0x932   :  { %1219 = vtanh.f32 %v540_v53  ;;  %v1055_v59 = vmul.f32 -1.442695, %v540_v53 }
 0x933   :  { %v537_v55 = vpop.f32.mrf.mxu1 }
 0x934   :  { %1221 = vpow2.f32 %v1055_v59  ;;  %v690_v55 = vld [vmem:[#allocation2 + $0xa] sm:$0x3] }
 0x935   :  { %v1138_v56 = vpop.f32.mrf.mxu1 }
 0x93f   :  { %v1220_v57 = vpop.eup %1219 }
 0x940   :  { %550 = vrot.lane.b32.xlu0 %v1220_v57, %s1411_s17 }
 0x941   :  { %v1222_v60 = vpop.eup %1221 }
 0x942   :  { %v544_v61 = vadd.f32 1.0, %v1222_v60 }
 0x944   :  { %569 = vperm.xlu0 %1188, %v1056_v58   ;;  %1223 = vrcp.f32 %v544_v61 }
 0x951   :  { %v1224_v62 = vpop.eup %1223 }
 0x952   :  { %v548_v8 = vmul.f32 %v1224_v62, %v484_v7 }
 0x9b2   :  { %v551_v63 = vpop.permute.xlu0 %550 }
 0x9b3   :  { %v553_v1 = vmul.f32 %v1224_v62, %v551_v63 }
 0x9b5   :  { %555 = vrot.lane.b32.xlu1 %v553_v1, %s1418_s6 }
 0x9b9   :  { %576 = vperm.xlu1 %1187, %v573_v2  }
 0x9bf   :  { %v570_v12 = vpop.permute.xlu0 %569 }
 0xa27   :  { %v556_v9 = vpop.permute.xlu1 %555 }
 0xa28   :  { %v558_v10 = vadd.f32 %v556_v9, %v548_v8 }
 0xa2a   :  { %1225 = vtanh.f32 %v558_v10  ;;  %v581_v38 = vmul.f32 %v570_v12, %v558_v10 }
 0xa34   :  { %v577_v13 = vpop.permute.xlu1 %576 }
 0xa35   :  { %v579_v17 = vmul.f32 %v577_v13, %v1585_v48  ;;  %v582_v37 = vmul.f32 %v577_v13, %v484_v7 }
 0xa37   :  { %v1226_v11 = vpop.eup %1225  ;;  %v583_v39 = vadd.f32 %v582_v37, %v581_v38 }
 0xa38   :  { %561 = vrot.lane.b32.xlu0 %v1226_v11, %s1411_s17 }
 0xaaa   :  { %v562_v14 = vpop.permute.xlu0 %561 }
 0xaab   :  { %v564_v15 = vmul.f32 %v1224_v62, %v562_v14 }
 0xaad   :  { %v572_v18 = vmul.f32 %v570_v12, %v564_v15 }
 0xaaf   :  { %v1604_v19 = vadd.f32 %v579_v17, %v572_v18 }
 0xab1   :  { %v592_v20 = vpack.c.bf16 %v1604_v19, %v1604_v19 }
 0xab3   :  { %594 = vrot.lane.b32.xlu1 %v592_v20, %s1418_s6 }
 0xb25   :  { %v595_v21 = vpop.permute.xlu1 %594 }
 0xb26   :  { %1144 = vmatmul.mubr.msk.bf16.vlgmr.msra.gmra.mxu0 %vm188_vm1, %v595_v21 }
 0xb27   :  { %1156 = vmatpush3.bf16.msra.mxu0 %v1504_v3  ;;  %1159 = vmatprep.mubr.msk.bf16.mxu0 %vm1416_vm0, %v1415_v0 }
 0xb28   :  { %1157 = vmatprep.subr.bf16.mxu0 %v1415_v0 }
 0xb2b   :  { %1158 = vmatpush3.bf16.msra.mxu0 %v1507_v4 }
 0xbe6   :  { %v633_v23 = vpop.f32.mrf.mxu0 }
 0xbe7   :  { %v639_v24 = vadd.f32 %v633_v23, %v591_v22 }
 0xbe8   :  { %v1145_v25 = vpop.f32.mrf.mxu0 }
 0xbe9   :  { %1227 = vtanh.f32 %v639_v24  ;;  %v1058_v30 = vmul.f32 -1.442695, %v639_v24  ;;  %v789_v24 = vld [vmem:[#allocation2 + $0xc] sm:$0x3] }
 0xbea   :  { %v636_v26 = vpop.f32.mrf.mxu0 }
 0xbeb   :  { %1229 = vpow2.f32 %v1058_v30 }
 0xbec   :  { %v1146_v27 = vpop.f32.mrf.mxu0 }
 0xbf6   :  { %v1228_v28 = vpop.eup %1227 }
 0xbf7   :  { %649 = vrot.lane.b32.xlu0 %v1228_v28, %s1411_s17 }
 0xbf8   :  { %v1230_v31 = vpop.eup %1229 }
 0xbf9   :  { %v643_v32 = vadd.f32 1.0, %v1230_v31  ;;  %v1065_v31 = vld [vmem:[%s1696_s1 + $0xc] sm:$0x3] }
 0xbfa   :  { %v870_v38 = vsub.f32 1.0, %v1065_v31 }
 0xbfb   :  { %668 = vperm.xlu0 %1188, %v1059_v29   ;;  %1231 = vrcp.f32 %v643_v32 }
 0xc08   :  { %v1232_v33 = vpop.eup %1231 }
 0xc09   :  { %v647_v40 = vmul.f32 %v1232_v33, %v583_v39 }
 0xc69   :  { %v650_v34 = vpop.permute.xlu0 %649 }
 0xc6a   :  { %v652_v35 = vmul.f32 %v1232_v33, %v650_v34 }
 0xc6c   :  { %654 = vrot.lane.b32.xlu1 %v652_v35, %s1418_s6 }
 0xc70   :  { %675 = vperm.xlu1 %1187, %v672_v36  }
 0xc76   :  { %v669_v44 = vpop.permute.xlu0 %668 }
 0xcde   :  { %v655_v41 = vpop.permute.xlu1 %654 }
 0xcdf   :  { %v657_v42 = vadd.f32 %v655_v41, %v647_v40 }
 0xce1   :  { %1233 = vtanh.f32 %v657_v42  ;;  %v680_v7 = vmul.f32 %v669_v44, %v657_v42 }
 0xceb   :  { %v676_v46 = vpop.permute.xlu1 %675 }
 0xcec   :  { %v678_v50 = vmul.f32 %v676_v46, %v1604_v19  ;;  %v681_v6 = vmul.f32 %v676_v46, %v583_v39 }
 0xcee   :  { %v1234_v43 = vpop.eup %1233  ;;  %v682_v8 = vadd.f32 %v681_v6, %v680_v7 }
 0xcef   :  { %660 = vrot.lane.b32.xlu0 %v1234_v43, %s1411_s17 }
 0xd61   :  { %v661_v47 = vpop.permute.xlu0 %660 }
 0xd62   :  { %v663_v49 = vmul.f32 %v1232_v33, %v661_v47 }
 0xd64   :  { %v671_v51 = vmul.f32 %v669_v44, %v663_v49 }
 0xd66   :  { %v1622_v52 = vadd.f32 %v678_v50, %v671_v51 }
 0xd68   :  { %v691_v53 = vpack.c.bf16 %v1622_v52, %v1622_v52 }
 0xd6a   :  { %693 = vrot.lane.b32.xlu1 %v691_v53, %s1418_s6 }
 0xddc   :  { %v694_v54 = vpop.permute.xlu1 %693 }
 0xddd   :  { %1152 = vmatmul.mubr.msk.bf16.vlgmr.msra.gmra.mxu1 %vm188_vm1, %v694_v54 }
 0xdde   :  { %1164 = vmatpush3.bf16.msra.mxu1 %v1504_v3  ;;  %1167 = vmatprep.mubr.msk.bf16.mxu1 %vm1416_vm0, %v1415_v0  ;;  %v1062_v3 = vld [vmem:[%s1696_s1 + $0xa] sm:$0x3] }
 0xddf   :  { %1165 = vmatprep.subr.bf16.mxu1 %v1415_v0  ;;  %v771_v5 = vsub.f32 1.0, %v1062_v3 }
 0xde2   :  { %1166 = vmatpush3.bf16.msra.mxu1 %v1507_v4 }
 0xe9d   :  { %v732_v56 = vpop.f32.mrf.mxu1 }
 0xe9e   :  { %v738_v57 = vadd.f32 %v732_v56, %v690_v55 }
 0xe9f   :  { %v1153_v58 = vpop.f32.mrf.mxu1 }
 0xea0   :  { %1235 = vtanh.f32 %v738_v57  ;;  %v1061_v62 = vmul.f32 -1.442695, %v738_v57  ;;  %v888_v58 = vld [vmem:[#allocation2 + $0xe] sm:$0x3] }
 0xea1   :  { %v735_v59 = vpop.f32.mrf.mxu1 }
 0xea2   :  { %1237 = vpow2.f32 %v1061_v62 }
 0xea3   :  { %v1154_v60 = vpop.f32.mrf.mxu1 }
 0xead   :  { %v1236_v61 = vpop.eup %1235 }
 0xeae   :  { %748 = vrot.lane.b32.xlu0 %v1236_v61, %s1411_s17 }
 0xeaf   :  { %v1238_v0 = vpop.eup %1237 }
 0xeb0   :  { %v742_v63 = vadd.f32 1.0, %v1238_v0 }
 0xeb2   :  { %767 = vperm.xlu0 %1188, %v1062_v3   ;;  %1239 = vrcp.f32 %v742_v63  ;;  %v1068_v63 = vld [vmem:[%s1696_s1 + $0xe] sm:$0x3]  ;;  %s1420_s1 = smov [#allocation12]  }
 0xebf   :  { %v1240_v4 = vpop.eup %1239 }
 0xec0   :  { %v746_v9 = vmul.f32 %v1240_v4, %v682_v8 }
 0xf20   :  { %v749_v1 = vpop.permute.xlu0 %748 }
 0xf21   :  { %v751_v2 = vmul.f32 %v1240_v4, %v749_v1 }
 0xf23   :  { %753 = vrot.lane.b32.xlu1 %v751_v2, %s1418_s6 }
 0xf27   :  { %774 = vperm.xlu1 %1187, %v771_v5  }
 0xf2d   :  { %v768_v13 = vpop.permute.xlu0 %767 }
 0xf95   :  { %v754_v10 = vpop.permute.xlu1 %753 }
 0xf96   :  { %v756_v11 = vadd.f32 %v754_v10, %v746_v9 }
 0xf98   :  { %1241 = vtanh.f32 %v756_v11  ;;  %v779_v40 = vmul.f32 %v768_v13, %v756_v11 }
 0xfa2   :  { %v775_v14 = vpop.permute.xlu1 %774 }
 0xfa3   :  { %v777_v18 = vmul.f32 %v775_v14, %v1622_v52  ;;  %v780_v39 = vmul.f32 %v775_v14, %v682_v8  ;;  %v969_v8 = vsub.f32 1.0, %v1068_v63 }
 0xfa5   :  { %v1242_v12 = vpop.eup %1241  ;;  %v781_v41 = vadd.f32 %v780_v39, %v779_v40 }
 0xfa6   :  { %759 = vrot.lane.b32.xlu0 %v1242_v12, %s1411_s17 }
0x1018   :  { %v760_v15 = vpop.permute.xlu0 %759 }
0x1019   :  { %v762_v17 = vmul.f32 %v1240_v4, %v760_v15 }
0x101b   :  { %v770_v20 = vmul.f32 %v768_v13, %v762_v17 }
0x101d   :  { %v1640_v21 = vadd.f32 %v777_v18, %v770_v20 }
0x101f   :  { %v790_v22 = vpack.c.bf16 %v1640_v21, %v1640_v21 }
0x1021   :  { %792 = vrot.lane.b32.xlu1 %v790_v22, %s1418_s6 }
0x1093   :  { %v793_v23 = vpop.permute.xlu1 %792 }
0x1094   :  { %1160 = vmatmul.mubr.msk.bf16.vlgmr.msra.gmra.mxu0 %vm188_vm1, %v793_v23 }
0x1154   :  { %v831_v25 = vpop.f32.mrf.mxu0 }
0x1155   :  { %v837_v26 = vadd.f32 %v831_v25, %v789_v24 }
0x1156   :  { %v1161_v27 = vpop.f32.mrf.mxu0 }
0x1157   :  { %1243 = vtanh.f32 %v837_v26  ;;  %v1064_v32 = vmul.f32 -1.442695, %v837_v26 }
0x1158   :  { %v834_v28 = vpop.f32.mrf.mxu0 }
0x1159   :  { %1245 = vpow2.f32 %v1064_v32 }
0x115a   :  { %v1162_v29 = vpop.f32.mrf.mxu0 }
0x1164   :  { %v1244_v30 = vpop.eup %1243 }
0x1165   :  { %847 = vrot.lane.b32.xlu0 %v1244_v30, %s1411_s17 }
0x1166   :  { %v1246_v33 = vpop.eup %1245 }
0x1167   :  { %v841_v34 = vadd.f32 1.0, %v1246_v33 }
0x1169   :  { %866 = vperm.xlu0 %1188, %v1065_v31   ;;  %1247 = vrcp.f32 %v841_v34 }
0x1176   :  { %v1248_v35 = vpop.eup %1247 }
0x1177   :  { %v845_v42 = vmul.f32 %v1248_v35, %v781_v41 }
0x11d7   :  { %v848_v36 = vpop.permute.xlu0 %847 }
0x11d8   :  { %v850_v37 = vmul.f32 %v1248_v35, %v848_v36 }
0x11da   :  { %852 = vrot.lane.b32.xlu1 %v850_v37, %s1418_s6 }
0x11de   :  { %873 = vperm.xlu1 %1187, %v870_v38  }
0x11e4   :  { %v867_v47 = vpop.permute.xlu0 %866 }
0x124c   :  { %v853_v43 = vpop.permute.xlu1 %852 }
0x124d   :  { %v855_v44 = vadd.f32 %v853_v43, %v845_v42 }
0x124f   :  { %1249 = vtanh.f32 %v855_v44  ;;  %v878_v10 = vmul.f32 %v867_v47, %v855_v44 }
0x1259   :  { %v874_v49 = vpop.permute.xlu1 %873 }
0x125a   :  { %v876_v53 = vmul.f32 %v874_v49, %v1640_v21  ;;  %v879_v9 = vmul.f32 %v874_v49, %v781_v41 }
0x125c   :  { %v1250_v46 = vpop.eup %1249  ;;  %v880_v11 = vadd.f32 %v879_v9, %v878_v10 }
0x125d   :  { %858 = vrot.lane.b32.xlu0 %v1250_v46, %s1411_s17 }
0x12cf   :  { %v859_v50 = vpop.permute.xlu0 %858 }
0x12d0   :  { %v861_v51 = vmul.f32 %v1248_v35, %v859_v50 }
0x12d2   :  { %v869_v54 = vmul.f32 %v867_v47, %v861_v51 }
0x12d4   :  { %v877_v55 = vadd.f32 %v876_v53, %v869_v54 }
0x12d6   :  { %v889_v56 = vpack.c.bf16 %v877_v55, %v877_v55 }
0x12d8   :  { %891 = vrot.lane.b32.xlu1 %v889_v56, %s1418_s6 }
0x134a   :  { %v892_v57 = vpop.permute.xlu1 %891 }
0x134b   :  { %1168 = vmatmul.mubr.msk.bf16.vlgmr.msra.gmra.mxu1 %vm188_vm1, %v892_v57 }
0x140b   :  { %v930_v59 = vpop.f32.mrf.mxu1 }
0x140c   :  { %v936_v60 = vadd.f32 %v930_v59, %v888_v58 }
0x140d   :  { %v1169_v61 = vpop.f32.mrf.mxu1 }
0x140e   :  { %1251 = vtanh.f32 %v936_v60  ;;  %v1067_v4 = vmul.f32 -1.442695, %v936_v60 }
0x140f   :  { %v933_v3 = vpop.f32.mrf.mxu1 }
0x1410   :  { %1253 = vpow2.f32 %v1067_v4 }
0x1411   :  { %v1170_v62 = vpop.f32.mrf.mxu1 }
0x141b   :  { %v1252_v0 = vpop.eup %1251 }
0x141c   :  { %946 = vrot.lane.b32.xlu0 %v1252_v0, %s1411_s17 }
0x141d   :  { %v1254_v1 = vpop.eup %1253 }
0x141e   :  { %v940_v2 = vadd.f32 1.0, %v1254_v1 }
0x1420   :  { %965 = vperm.xlu0 %1188, %v1068_v63   ;;  %1255 = vrcp.f32 %v940_v2 }
0x142d   :  { %v1256_v5 = vpop.eup %1255 }
0x142e   :  { %v944_v12 = vmul.f32 %v1256_v5, %v880_v11 }
0x148e   :  { %v947_v6 = vpop.permute.xlu0 %946 }
0x148f   :  { %v949_v7 = vmul.f32 %v1256_v5, %v947_v6 }
0x1491   :  { %951 = vrot.lane.b32.xlu1 %v949_v7, %s1418_s6 }
0x1495   :  { %972 = vperm.xlu1 %1187, %v969_v8  }
0x1499   :  { %387 = vrot.lane.b32.xlu1 %v1566_v16, %s1418_s6 }
0x149b   :  { %v966_v15 = vpop.permute.xlu0 %965 }
0x149d   :  { %585 = vrot.lane.b32.xlu1 %v1604_v19, %s1418_s6 }
0x14a1   :  { %783 = vrot.lane.b32.xlu1 %v1640_v21, %s1418_s6 }
0x1503   :  { %v952_v13 = vpop.permute.xlu1 %951 }
0x1504   :  { %v954_v14 = vadd.f32 %v952_v13, %v944_v12 }
0x1506   :  { %1257 = vtanh.f32 %v954_v14  ;;  %v977_v18 = vmul.f32 %v966_v15, %v954_v14 }
0x1510   :  { %v973_v17 = vpop.permute.xlu1 %972 }
0x1511   :  { %v978_v20 = vmul.f32 %v973_v17, %v880_v11  ;;  %v975_v26 = vmul.f32 %v973_v17, %v877_v55 }
0x1513   :  { %v1258_v22 = vpop.eup %1257  ;;  %v979_v16 = vadd.f32 %v978_v20, %v977_v18 }
0x1514   :  { %v388_v23 = vpop.permute.xlu1 %387  ;;  %957 = vrot.lane.b32.xlu0 %v1258_v22, %s1411_s17  ;;  %s1010_s17 = sshll.u32 %s1420_s1, 4  ;;  %s1011_s17 = int_to_ptr.vmem [resolvable:$true] %s1010_s17 }
0x1515   :  { %391 = vst.msk [vmem:[#allocation11 + $0x2] sm:$0x3] %vm291_vm3, %v388_v23  ;;  %s1339_s10 = scalar_lea.vmem %s1011_s17, 32  ;;  %p1344_p7 = scmp.lt.s32.totalorder %s1011_s17, %s1011_s17 }
0x1516   :  { %p1340_p6 = scmp.ne.s32.totalorder %s1011_s17, %s1339_s10  ;;  %p1345_p8 = scmp.lt.s32.totalorder %s1339_s10, %s1339_s10 }
0x1518   :  { %v586_v19 = vpop.permute.xlu1 %585  ;;  %288 = vrot.lane.b32.xlu0 %v1546_v45, %s1418_s6  ;;  %p1346_p9 = por %p1345_p8, %p1344_p7 }
0x1519   :  { %589 = vst.msk [vmem:[#allocation11 + $0x6] sm:$0x3] %vm291_vm3, %v586_v19 }
0x151a   :  { %p1347_p10 = pnand %p1346_p9, %p1340_p6 }
0x151c   :  { %v784_v21 = vpop.permute.xlu1 %783  ;;  %486 = vrot.lane.b32.xlu0 %v1585_v48, %s1418_s6 }
0x151d   :  { %787 = vst.msk [vmem:[#allocation11 + $0xa] sm:$0x3] %vm291_vm3, %v784_v21 }
0x1520   :  { %684 = vrot.lane.b32.xlu0 %v1622_v52, %s1418_s6 }
0x1524   :  { %882 = vrot.lane.b32.xlu0 %v877_v55, %s1418_s6 }
0x1586   :  { %v958_v24 = vpop.permute.xlu0 %957 }
0x1587   :  { %v960_v25 = vmul.f32 %v1256_v5, %v958_v24 }
0x1589   :  { %v968_v27 = vmul.f32 %v966_v15, %v960_v25 }
0x158a   :  { %v289_v28 = vpop.permute.xlu0 %288 }
0x158b   :  { %292 = vst.msk [vmem:[#allocation11] sm:$0x3] %vm291_vm3, %v289_v28  ;;  %v976_v45 = vadd.f32 %v975_v26, %v968_v27 }
0x158d   :  { %981 = vrot.lane.b32.xlu1 %v976_v45, %s1418_s6 }
0x158e   :  { %v487_v29 = vpop.permute.xlu0 %486 }
0x158f   :  { %490 = vst.msk [vmem:[#allocation11 + $0x4] sm:$0x3] %vm291_vm3, %v487_v29 }
0x1591   :  { %988 = vrot.lane.b32.xlu1 %v979_v16, %s1419_s15 }
0x1592   :  { %v685_v48 = vpop.permute.xlu0 %684 }
0x1593   :  { %688 = vst.msk [vmem:[#allocation11 + $0x8] sm:$0x3] %vm291_vm3, %v685_v48 }
0x1596   :  { %v883_v52 = vpop.permute.xlu0 %882 }
0x1597   :  { %886 = vst.msk [vmem:[#allocation11 + $0xc] sm:$0x3] %vm291_vm3, %v883_v52 }
0x15ff   :  { %v982_v30 = vpop.permute.xlu1 %981 }
0x1600   :  { %985 = vst.msk [vmem:[#allocation11 + $0xe] sm:$0x3] %vm291_vm3, %v982_v30  ;;  %986 = vst.msk [vmem:[#allocation12] sm:$0x3] %vm291_vm3, %v982_v30 }
0x1601   :  { %1350 = shalt.err (!%p1347_p10)
}
0x1602   :  { %1013 = dma.vmem_to_hbm [thread:$0]  %s1011_s17, 32, %s1703_s8, [#allocation13]  }
0x1603   :  { %s1359_s12 = scalar_lea.vmem %s998_s5, 256  ;;  %p1364_p12 = scmp.lt.s32.totalorder %s998_s5, %s998_s5 }
0x1604   :  { %p1360_p11 = scmp.ne.s32.totalorder %s998_s5, %s1359_s12  ;;  %p1365_p13 = scmp.lt.s32.totalorder %s1359_s12, %s1359_s12 }
0x1606   :  { %p1366_p0 = por %p1365_p13, %p1364_p12 }
0x1608   :  { %p1367_p1 = pnand %p1366_p0, %p1360_p11 }
0x160a   :  { %1370 = shalt.err (!%p1367_p1)
}
0x160b   :  { %s1423_s6 = smov 128   ;;  %s1424_s13 = smov 8   ;;  %v989_v31 = vpop.permute.xlu1 %988 }
0x160c   :  { %1003 = dma.vmem_to_hbm [thread:$0]  %s998_s5, 256, %s1702_s7, [#allocation5], %s1423_s6, %s1423_s6, %s1424_s13   ;;  %991 = vst.msk [vmem:[#allocation14] sm:$0x3] %vm291_vm3, %v989_v31 }
0x160d   :  { %s1379_s16 = scalar_lea.vmem %s1021_s30, 32  ;;  %p1384_p3 = scmp.lt.s32.totalorder %s1021_s30, %s1021_s30 }
0x160e   :  { %p1380_p2 = scmp.ne.s32.totalorder %s1021_s30, %s1379_s16  ;;  %p1385_p4 = scmp.lt.s32.totalorder %s1379_s16, %s1379_s16 }
0x1610   :  { %p1386_p5 = por %p1385_p4, %p1384_p3 }
0x1612   :  { %p1387_p6 = pnand %p1386_p5, %p1380_p2 }
0x1614   :  { %1390 = shalt.err (!%p1387_p6)
}
0x1615   :  { %1023 = dma.vmem_to_hbm [thread:$0]  %s1021_s30, 32, %s1704_s9, [#allocation13]  }
0x1616   :  { %1405 = dma.done.wait [#allocation5], 256  }
0x1617   :  { %1406 = vsyncadd [#allocation5], 4294967040 }
0x1618   :  { %1407 = dma.done.wait [#allocation13], 64  }
0x1619   :  { %1408 = vsyncadd [#allocation13], 4294967232 }
0x161a   :  { %1033 = vsyncpa [#allocation4], 1 }
0x161b   :  { %1034 = vsyncpa [#allocation7], 1 }
0x161c   :  { %1035 = vsyncpa [#allocation10], 1 }
0x161d   :  { %1036 = vsyncpa [#allocation5], 1 }
0x161e   :  { %1037 = vsyncpa [#allocation13], 1 }

</bundles_post_ra>
